<compile_context>
chip_gen: v7x
topology: tpu7x:2x2x1
jax: 0.10.0
libtpu: 0.0.40
codegen_flags: <defaults>
</compile_context>

<pallas_src>
import jax
import jax.numpy as jnp
from jax.experimental import pallas as pl
from jax.experimental.pallas import tpu as pltpu

OUT_WIDTH = 128  # lane-dense output slab width (>= action_dim + 1)


# --------------------------------------------------------------------------- #
# Kernel
# --------------------------------------------------------------------------- #
def mcp_kernel(x_ref, w1_ref, b1_ref, wg2_ref, bg2_ref, eb_ref, w2p_ref,
               wv_out_ref, wa_out_ref, b_out_ref, out_ref):
    G = wg2_ref.shape[0]       # gate / primitive hidden width (256)
    PG = w2p_ref.shape[0]      # num_primitives * G

    x = x_ref[...].astype(jnp.bfloat16)                              # (Bt, H)

    # --- GEMM 1: fused first layers [gate | value | primitives], ReLU in f32 -
    h = jnp.dot(x, w1_ref[...], preferred_element_type=jnp.float32) + b1_ref[...]
    h = jnp.maximum(h, 0.0)                                          # (Bt, 2G+PG)
    gh = h[:, :G]              # gate hidden        (Bt, G)
    vh = h[:, G:2 * G]         # value hidden       (Bt, G)
    ph = h[:, 2 * G:]          # primitive hiddens  (Bt, PG), flattened

    # --- GEMM 2: gate head; sigmoid on the EUP in f32 -----------------------
    gl = (jnp.dot(gh.astype(jnp.bfloat16), wg2_ref[...],
                  preferred_element_type=jnp.float32) + bg2_ref[...])
    gate = jax.nn.sigmoid(gl)                                        # (Bt, P)

    # --- GEMM 3: per-group gate broadcast + (gate @ bp2) in one MXU pass ----
    # eb = [one-hot group expansion (P, PG) | bp2 (P, H)]
    aux = jnp.dot(gate.astype(jnp.bfloat16), eb_ref[...],
                  preferred_element_type=jnp.float32)                # (Bt, PG+H)
    gate_wide = aux[:, :PG]                                          # (Bt, PG)
    gate_bias = aux[:, PG:]                                          # (Bt, H)

    # --- GEMM 4: gated primitive mixture as one big-K matmul ----------------
    scaled = (ph * gate_wide).astype(jnp.bfloat16)                   # (Bt, PG)
    composed = (jnp.dot(scaled, w2p_ref[...],
                        preferred_element_type=jnp.float32)
                + gate_bias)                                         # (Bt, H)

    # --- GEMMs 5+6: lane-dense output slab [action logits | value | 0-pad] --
    out = (jnp.dot(vh.astype(jnp.bfloat16), wv_out_ref[...],
                   preferred_element_type=jnp.float32)
           + jnp.dot(composed.astype(jnp.bfloat16), wa_out_ref[...],
                     preferred_element_type=jnp.float32)
           + b_out_ref[...])                                         # (Bt, 128)
    out_ref[...] = out.astype(out_ref.dtype)


# --------------------------------------------------------------------------- #
# Wrapper
# --------------------------------------------------------------------------- #
def mcp_pacman_forward(features, packed, action_dim):
    B, H = features.shape
    b_tile = B if B <= 256 else 256          # batch tile (full MXU M when big)

    weights = (packed["w1"], packed["b1"], packed["wg2"], packed["bg2"],
               packed["eb"], packed["w2p"], packed["wv_out"], packed["wa_out"],
               packed["b_out"])

    def resident(arr):
        # Full-array block, constant index_map -> stays VMEM-resident.
        return pl.BlockSpec(arr.shape, lambda i: (0, 0))

    in_specs = [pl.BlockSpec((b_tile, H), lambda i: (i, 0))]
    in_specs += [resident(w) for w in weights]

    out_slab = pl.pallas_call(
        mcp_kernel,
        grid=(pl.cdiv(B, b_tile),),
        out_shape=jax.ShapeDtypeStruct((B, OUT_WIDTH), jnp.float32),
        in_specs=in_specs,
        out_specs=pl.BlockSpec((b_tile, OUT_WIDTH), lambda i: (i, 0)),
        compiler_params=pltpu.CompilerParams(
            dimension_semantics=("parallel",),          # megacore on v7x
            vmem_limit_bytes=32 * 1024 * 1024),
    )(features, *weights)

    logits = out_slab[:, :action_dim]
    value = out_slab[:, action_dim:action_dim + 1]
    return logits, value


# --------------------------------------------------------------------------- #
# Parameter construction / packing
# --------------------------------------------------------------------------- #
def init_params(key, hidden_dim, action_dim, num_primitives, gate_hidden=256):
    """Natural (per-layer, f32) params, weights stored as (in, out)."""
    ks = jax.random.split(key, 8)

    def lin_w(k, fan_in, fan_out):
        s = 1.0 / jnp.sqrt(fan_in)
        return jax.random.uniform(k, (fan_in, fan_out), jnp.float32, -s, s)

    wg1 = lin_w(ks[0], hidden_dim, gate_hidden)
    bg1 = jnp.zeros((1, gate_hidden), jnp.float32)
    wg2 = lin_w(ks[1], gate_hidden, num_primitives)
    bg2 = jnp.zeros((1, num_primitives), jnp.float32)

    s1 = 1.0 / jnp.sqrt(hidden_dim)
    wp1 = jax.random.uniform(ks[2], (num_primitives, hidden_dim, gate_hidden),
                             jnp.float32, -s1, s1)
    bp1 = jnp.zeros((num_primitives, gate_hidden), jnp.float32)
    # final primitive layer: small init (mimics nn.init.orthogonal_ gain=0.01)
    wp2 = 0.01 * jax.random.normal(
        ks[3], (num_primitives, gate_hidden, hidden_dim), jnp.float32)
    bp2 = jnp.zeros((num_primitives, hidden_dim), jnp.float32)

    # action_map: small init (mimics nn.init.orthogonal_ gain=0.01)
    wa = 0.01 * jax.random.normal(ks[4], (hidden_dim, action_dim), jnp.float32)
    ba = jnp.zeros((1, action_dim), jnp.float32)

    wv1 = lin_w(ks[5], hidden_dim, gate_hidden)
    bv1 = jnp.zeros((1, gate_hidden), jnp.float32)
    wv2 = lin_w(ks[6], gate_hidden, 1)
    bv2 = jnp.zeros((1, 1), jnp.float32)

    return dict(wg1=wg1, bg1=bg1, wg2=wg2, bg2=bg2, wp1=wp1, bp1=bp1,
                wp2=wp2, bp2=bp2, wa=wa, ba=ba, wv1=wv1, bv1=bv1,
                wv2=wv2, bv2=bv2)


def pack_params(p, action_dim, out_width=OUT_WIDTH):
    """Host-side fusion of the per-layer params into the kernel's GEMM layout.
    Weights -> bfloat16 (MXU-native); biases stay f32."""
    H, G = p["wg1"].shape
    P = p["wg2"].shape[1]
    A = action_dim
    assert A + 1 <= out_width

    # Fused first-layer weight: [gate-L1 | value-L1 | primitive-L1 x P].
    wp1_flat = jnp.transpose(p["wp1"], (1, 0, 2)).reshape(H, P * G)
    w1 = jnp.concatenate([p["wg1"], p["wv1"], wp1_flat], axis=1)     # (H, 2G+PG)
    b1 = jnp.concatenate([p["bg1"], p["bv1"], p["bp1"].reshape(1, P * G)],
                         axis=1)                                      # (1, 2G+PG)

    # Gate-broadcast expansion matrix with primitive output biases folded in.
    expand = jnp.repeat(jnp.eye(P, dtype=jnp.float32), G, axis=1)     # (P, PG)
    eb = jnp.concatenate([expand, p["bp2"]], axis=1)                  # (P, PG+H)

    # Primitive second layers stacked along K.
    w2p = p["wp2"].reshape(P * G, H)                                  # (PG, H)

    # Lane-dense output heads: logits in cols [0, A), value in col A.
    wa_out = jnp.zeros((H, out_width), jnp.float32).at[:, :A].set(p["wa"])
    wv_out = jnp.zeros((G, out_width), jnp.float32).at[:, A:A + 1].set(p["wv2"])
    b_out = (jnp.zeros((1, out_width), jnp.float32)
             .at[:, :A].set(p["ba"])
             .at[:, A:A + 1].set(p["bv2"]))

    bf16 = lambda w: w.astype(jnp.bfloat16)
    return dict(w1=bf16(w1), b1=b1, wg2=bf16(p["wg2"]), bg2=p["bg2"],
                eb=bf16(eb), w2p=bf16(w2p), wv_out=bf16(wv_out),
                wa_out=bf16(wa_out), b_out=b_out)


# --------------------------------------------------------------------------- #
# Pure-JAX reference (mirrors the PyTorch forward, f32)
# --------------------------------------------------------------------------- #
def reference_forward(features, p):
    gh = jnp.maximum(features @ p["wg1"] + p["bg1"], 0.0)
    gate = jax.nn.sigmoid(gh @ p["wg2"] + p["bg2"])                   # (B, P)
    lats = []
    for i in range(p["wp1"].shape[0]):
        hh = jnp.maximum(features @ p["wp1"][i] + p["bp1"][i], 0.0)
        lats.append(hh @ p["wp2"][i] + p["bp2"][i])
    lats = jnp.stack(lats, axis=1)                                    # (B, P, H)
    composed = (gate[..., None] * lats).sum(axis=1)                   # (B, H)
    logits = composed @ p["wa"] + p["ba"]
    vh = jnp.maximum(features @ p["wv1"] + p["bv1"], 0.0)
    value = vh @ p["wv2"] + p["bv2"]
    return logits, value


# --------------------------------------------------------------------------- #
if __name__ == "__main__":
    B = 8          # batch
    HIDDEN = 32    # hidden_dim (width of `features`; already feature-extracted)
    ACTIONS = 9    # Pacman action_dim
    PRIMS = 8      # num_primitives

    key = jax.random.PRNGKey(0)
    k_x, k_p = jax.random.split(key)
    features = jax.random.normal(k_x, (B, HIDDEN), jnp.float32)
    params = init_params(k_p, HIDDEN, ACTIONS, PRIMS)
    packed = pack_params(params, ACTIONS)

    logits, value = mcp_pacman_forward(features, packed, ACTIONS)
    logits, value = jax.block_until_ready((logits, value))

    ref_logits, ref_value = reference_forward(features, params)
    assert logits.shape == (B, ACTIONS) and value.shape == (B, 1)
    # bf16 matmul operands (f32 accumulation) => looser tolerance than pure f32.
    assert jnp.allclose(logits, ref_logits, atol=2e-2, rtol=2e-2), \
        float(jnp.max(jnp.abs(logits - ref_logits)))
    assert jnp.allclose(value, ref_value, atol=2e-2, rtol=2e-2), \
        float(jnp.max(jnp.abs(value - ref_value)))

    print("KERNEL_OK")
</pallas_src>

<mosaic_0001>
module attributes {stable_mosaic.version = 11 : i64} {
  func.func @mcp_kernel(%arg0: i32, %arg1: memref<8x32xf32, #tpu.memory_space<vmem>>, %arg2: memref<32x2560xbf16, #tpu.memory_space<vmem>>, %arg3: memref<1x2560xf32, #tpu.memory_space<vmem>>, %arg4: memref<256x8xbf16, #tpu.memory_space<vmem>>, %arg5: memref<1x8xf32, #tpu.memory_space<vmem>>, %arg6: memref<8x2080xbf16, #tpu.memory_space<vmem>>, %arg7: memref<2048x32xbf16, #tpu.memory_space<vmem>>, %arg8: memref<256x128xbf16, #tpu.memory_space<vmem>>, %arg9: memref<32x128xbf16, #tpu.memory_space<vmem>>, %arg10: memref<1x128xf32, #tpu.memory_space<vmem>>, %arg11: memref<8x128xf32, #tpu.memory_space<vmem>>) attributes {dimension_semantics = [#tpu.dimension_semantics<parallel>], iteration_bounds = array<i64: 1>, scalar_prefetch = 0 : i64, scratch_operands = 0 : i64, tpu.core_type = #tpu.core_type<tc>, window_params = [{transform_indices = @transform_0, window_bounds = array<i64: 8, 32>}, {pipeline_mode = #tpu.pipeline_mode<synchronous>, transform_indices = @transform_1, window_bounds = array<i64: 32, 2560>}, {pipeline_mode = #tpu.pipeline_mode<synchronous>, transform_indices = @transform_2, window_bounds = array<i64: 1, 2560>}, {pipeline_mode = #tpu.pipeline_mode<synchronous>, transform_indices = @transform_3, window_bounds = array<i64: 256, 8>}, {pipeline_mode = #tpu.pipeline_mode<synchronous>, transform_indices = @transform_4, window_bounds = array<i64: 1, 8>}, {pipeline_mode = #tpu.pipeline_mode<synchronous>, transform_indices = @transform_5, window_bounds = array<i64: 8, 2080>}, {pipeline_mode = #tpu.pipeline_mode<synchronous>, transform_indices = @transform_6, window_bounds = array<i64: 2048, 32>}, {pipeline_mode = #tpu.pipeline_mode<synchronous>, transform_indices = @transform_7, window_bounds = array<i64: 256, 128>}, {pipeline_mode = #tpu.pipeline_mode<synchronous>, transform_indices = @transform_8, window_bounds = array<i64: 32, 128>}, {pipeline_mode = #tpu.pipeline_mode<synchronous>, transform_indices = @transform_9, window_bounds = array<i64: 1, 128>}, {transform_indices = @transform_10, window_bounds = array<i64: 8, 128>}]} {
    %c0 = arith.constant 0 : index
    %c0_0 = arith.constant 0 : index
    %0 = vector.load %arg1[%c0, %c0_0] : memref<8x32xf32, #tpu.memory_space<vmem>>, vector<8x32xf32>
    %1 = arith.truncf %0 : vector<8x32xf32> to vector<8x32xbf16>
    %c0_1 = arith.constant 0 : index
    %c0_2 = arith.constant 0 : index
    %2 = vector.load %arg2[%c0_1, %c0_2] : memref<32x2560xbf16, #tpu.memory_space<vmem>>, vector<32x2560xbf16>
    %cst = arith.constant dense<0.000000e+00> : vector<8x2560xf32>
    %3 = tpu.matmul %1, %2, %cst {dimension_numbers = #tpu.dot_dimension_numbers<[1], [0], [0], [1], [0, 0, 1, 1], [], []>} : vector<8x32xbf16>, vector<32x2560xbf16>, vector<8x2560xf32> -> vector<8x2560xf32>
    %c0_3 = arith.constant 0 : index
    %c0_4 = arith.constant 0 : index
    %4 = vector.load %arg3[%c0_3, %c0_4] : memref<1x2560xf32, #tpu.memory_space<vmem>>, vector<1x2560xf32>
    %5 = vector.broadcast %4 : vector<1x2560xf32> to vector<8x2560xf32>
    %6 = arith.addf %3, %5 : vector<8x2560xf32>
    %cst_5 = arith.constant 0.000000e+00 : f32
    %7 = vector.broadcast %cst_5 : f32 to vector<8x2560xf32>
    %8 = arith.maximumf %6, %7 : vector<8x2560xf32>
    %9 = vector.extract_strided_slice %8 {offsets = [0, 0], sizes = [8, 256], strides = [1, 1]} : vector<8x2560xf32> to vector<8x256xf32>
    %10 = vector.extract_strided_slice %8 {offsets = [0, 256], sizes = [8, 256], strides = [1, 1]} : vector<8x2560xf32> to vector<8x256xf32>
    %11 = vector.extract_strided_slice %8 {offsets = [0, 512], sizes = [8, 2048], strides = [1, 1]} : vector<8x2560xf32> to vector<8x2048xf32>
    %12 = arith.truncf %9 : vector<8x256xf32> to vector<8x256xbf16>
    %c0_6 = arith.constant 0 : index
    %c0_7 = arith.constant 0 : index
    %13 = vector.load %arg4[%c0_6, %c0_7] : memref<256x8xbf16, #tpu.memory_space<vmem>>, vector<256x8xbf16>
    %cst_8 = arith.constant dense<0.000000e+00> : vector<8x8xf32>
    %14 = tpu.matmul %12, %13, %cst_8 {dimension_numbers = #tpu.dot_dimension_numbers<[1], [0], [0], [1], [0, 0, 1, 1], [], []>} : vector<8x256xbf16>, vector<256x8xbf16>, vector<8x8xf32> -> vector<8x8xf32>
    %c0_9 = arith.constant 0 : index
    %c0_10 = arith.constant 0 : index
    %15 = vector.load %arg5[%c0_9, %c0_10] : memref<1x8xf32, #tpu.memory_space<vmem>>, vector<1x8xf32>
    %16 = vector.broadcast %15 : vector<1x8xf32> to vector<8x8xf32>
    %17 = arith.addf %14, %16 : vector<8x8xf32>
    %18 = arith.negf %17 : vector<8x8xf32>
    %19 = math.exp %18 : vector<8x8xf32>
    %cst_11 = arith.constant 1.000000e+00 : f32
    %20 = vector.broadcast %cst_11 : f32 to vector<8x8xf32>
    %21 = arith.addf %20, %19 : vector<8x8xf32>
    %22 = arith.divf %20, %21 : vector<8x8xf32>
    %23 = arith.truncf %22 : vector<8x8xf32> to vector<8x8xbf16>
    %c0_12 = arith.constant 0 : index
    %c0_13 = arith.constant 0 : index
    %24 = vector.load %arg6[%c0_12, %c0_13] : memref<8x2080xbf16, #tpu.memory_space<vmem>>, vector<8x2080xbf16>
    %cst_14 = arith.constant dense<0.000000e+00> : vector<8x2080xf32>
    %25 = tpu.matmul %23, %24, %cst_14 {dimension_numbers = #tpu.dot_dimension_numbers<[1], [0], [0], [1], [0, 0, 1, 1], [], []>} : vector<8x8xbf16>, vector<8x2080xbf16>, vector<8x2080xf32> -> vector<8x2080xf32>
    %26 = vector.extract_strided_slice %25 {offsets = [0, 0], sizes = [8, 2048], strides = [1, 1]} : vector<8x2080xf32> to vector<8x2048xf32>
    %27 = vector.extract_strided_slice %25 {offsets = [0, 2048], sizes = [8, 32], strides = [1, 1]} : vector<8x2080xf32> to vector<8x32xf32>
    %28 = arith.mulf %11, %26 : vector<8x2048xf32>
    %29 = arith.truncf %28 : vector<8x2048xf32> to vector<8x2048xbf16>
    %c0_15 = arith.constant 0 : index
    %c0_16 = arith.constant 0 : index
    %30 = vector.load %arg7[%c0_15, %c0_16] : memref<2048x32xbf16, #tpu.memory_space<vmem>>, vector<2048x32xbf16>
    %cst_17 = arith.constant dense<0.000000e+00> : vector<8x32xf32>
    %31 = tpu.matmul %29, %30, %cst_17 {dimension_numbers = #tpu.dot_dimension_numbers<[1], [0], [0], [1], [0, 0, 1, 1], [], []>} : vector<8x2048xbf16>, vector<2048x32xbf16>, vector<8x32xf32> -> vector<8x32xf32>
    %32 = arith.addf %31, %27 : vector<8x32xf32>
    %33 = arith.truncf %10 : vector<8x256xf32> to vector<8x256xbf16>
    %c0_18 = arith.constant 0 : index
    %c0_19 = arith.constant 0 : index
    %34 = vector.load %arg8[%c0_18, %c0_19] : memref<256x128xbf16, #tpu.memory_space<vmem>>, vector<256x128xbf16>
    %cst_20 = arith.constant dense<0.000000e+00> : vector<8x128xf32>
    %35 = tpu.matmul %33, %34, %cst_20 {dimension_numbers = #tpu.dot_dimension_numbers<[1], [0], [0], [1], [0, 0, 1, 1], [], []>} : vector<8x256xbf16>, vector<256x128xbf16>, vector<8x128xf32> -> vector<8x128xf32>
    %36 = arith.truncf %32 : vector<8x32xf32> to vector<8x32xbf16>
    %c0_21 = arith.constant 0 : index
    %c0_22 = arith.constant 0 : index
    %37 = vector.load %arg9[%c0_21, %c0_22] : memref<32x128xbf16, #tpu.memory_space<vmem>>, vector<32x128xbf16>
    %cst_23 = arith.constant dense<0.000000e+00> : vector<8x128xf32>
    %38 = tpu.matmul %36, %37, %cst_23 {dimension_numbers = #tpu.dot_dimension_numbers<[1], [0], [0], [1], [0, 0, 1, 1], [], []>} : vector<8x32xbf16>, vector<32x128xbf16>, vector<8x128xf32> -> vector<8x128xf32>
    %39 = arith.addf %35, %38 : vector<8x128xf32>
    %c0_24 = arith.constant 0 : index
    %c0_25 = arith.constant 0 : index
    %40 = vector.load %arg10[%c0_24, %c0_25] : memref<1x128xf32, #tpu.memory_space<vmem>>, vector<1x128xf32>
    %41 = vector.broadcast %40 : vector<1x128xf32> to vector<8x128xf32>
    %42 = arith.addf %39, %41 : vector<8x128xf32>
    %c0_26 = arith.constant 0 : index
    %c0_27 = arith.constant 0 : index
    %43 = vector.load %arg11[%c0_26, %c0_27] : memref<8x128xf32, #tpu.memory_space<vmem>>, vector<8x128xf32>
    tpu.vector_store %arg11[%c0_26, %c0_27], %42 {strides = array<i32>} : memref<8x128xf32, #tpu.memory_space<vmem>>, vector<8x128xf32>,
    return
  }
  func.func @transform_0(%arg0: i32) -> (i32, i32) {
    %c0_i32 = arith.constant 0 : i32
    %c0_i32_0 = arith.constant 0 : i32
    return %arg0, %c0_i32 : i32, i32
  }
  func.func @transform_1(%arg0: i32) -> (i32, i32) {
    %c0_i32 = arith.constant 0 : i32
    %c0_i32_0 = arith.constant 0 : i32
    %c0_i32_1 = arith.constant 0 : i32
    return %c0_i32, %c0_i32_0 : i32, i32
  }
  func.func @transform_2(%arg0: i32) -> (i32, i32) {
    %c0_i32 = arith.constant 0 : i32
    %c0_i32_0 = arith.constant 0 : i32
    %c0_i32_1 = arith.constant 0 : i32
    return %c0_i32, %c0_i32_0 : i32, i32
  }
  func.func @transform_3(%arg0: i32) -> (i32, i32) {
    %c0_i32 = arith.constant 0 : i32
    %c0_i32_0 = arith.constant 0 : i32
    %c0_i32_1 = arith.constant 0 : i32
    return %c0_i32, %c0_i32_0 : i32, i32
  }
  func.func @transform_4(%arg0: i32) -> (i32, i32) {
    %c0_i32 = arith.constant 0 : i32
    %c0_i32_0 = arith.constant 0 : i32
    %c0_i32_1 = arith.constant 0 : i32
    return %c0_i32, %c0_i32_0 : i32, i32
  }
  func.func @transform_5(%arg0: i32) -> (i32, i32) {
    %c0_i32 = arith.constant 0 : i32
    %c0_i32_0 = arith.constant 0 : i32
    %c0_i32_1 = arith.constant 0 : i32
    return %c0_i32, %c0_i32_0 : i32, i32
  }
  func.func @transform_6(%arg0: i32) -> (i32, i32) {
    %c0_i32 = arith.constant 0 : i32
    %c0_i32_0 = arith.constant 0 : i32
    %c0_i32_1 = arith.constant 0 : i32
    return %c0_i32, %c0_i32_0 : i32, i32
  }
  func.func @transform_7(%arg0: i32) -> (i32, i32) {
    %c0_i32 = arith.constant 0 : i32
    %c0_i32_0 = arith.constant 0 : i32
    %c0_i32_1 = arith.constant 0 : i32
    return %c0_i32, %c0_i32_0 : i32, i32
  }
  func.func @transform_8(%arg0: i32) -> (i32, i32) {
    %c0_i32 = arith.constant 0 : i32
    %c0_i32_0 = arith.constant 0 : i32
    %c0_i32_1 = arith.constant 0 : i32
    return %c0_i32, %c0_i32_0 : i32, i32
  }
  func.func @transform_9(%arg0: i32) -> (i32, i32) {
    %c0_i32 = arith.constant 0 : i32
    %c0_i32_0 = arith.constant 0 : i32
    %c0_i32_1 = arith.constant 0 : i32
    return %c0_i32, %c0_i32_0 : i32, i32
  }
  func.func @transform_10(%arg0: i32) -> (i32, i32) {
    %c0_i32 = arith.constant 0 : i32
    %c0_i32_0 = arith.constant 0 : i32
    return %arg0, %c0_i32 : i32, i32
  }
}

</mosaic_0001>

<bundles_post_ra>
// kernel: tpu_custom_call.1
= control target key start
LH: loop header
LB: loop body
LE: loop exit
PB: predicated region body
PF: predicated region fallthrough
CT: control target
= control target key end

     0   :  { %v3868_v2 = vmov 0   ;;  %vm385_vm0 = vcmask 261120   ;;  %s4827_s0 = inlined_call_operand.vmem [shape: f32[8,32], index: 0, kind: input, shape index: {}]   ;;  %s4828_s1 = inlined_call_operand.vmem [shape: bf16[32,2560], index: 1, kind: input, shape index: {}]   ;;  %s4829_s2 = inlined_call_operand.vmem [shape: f32[1,2560], index: 2, kind: input, shape index: {}]   ;;  %s4830_s3 = inlined_call_operand.vmem [shape: bf16[256,8], index: 3, kind: input, shape index: {}]   ;;  %s4831_s4 = inlined_call_operand.vmem [shape: f32[1,8], index: 4, kind: input, shape index: {}]   ;;  %s4832_s5 = inlined_call_operand.vmem [shape: bf16[8,2080], index: 5, kind: input, shape index: {}]   ;;  %s4833_s6 = inlined_call_operand.vmem [shape: bf16[2048,32], index: 6, kind: input, shape index: {}]   ;;  %s4834_s7 = inlined_call_operand.vmem [shape: bf16[256,128], index: 7, kind: input, shape index: {}]   ;;  %s4835_s8 = inlined_call_operand.vmem [shape: bf16[32,128], index: 8, kind: input, shape index: {}]   ;;  %s4836_s9 = inlined_call_operand.vmem [shape: f32[1,128], index: 9, kind: input, shape index: {}]   ;;  %s4837_s10 = inlined_call_operand.hbm [shape: f32[8,128], index: 10, kind: output, shape index: {}]  }
   0x1   :  { %v3601_v0 = vld [vmem:[%s4828_s1 + $0x4] ss:$80 sps:$4 sm:$0xff]   ;;  %v3603_v1 = vld [vmem:[%s4828_s1] ss:$80 sps:$4 sm:$0xff]   ;;  %421 = vmatprep.mubr.bf16.mxu1 %v3868_v2  ;;  %585 = vmatprep.mubr.bf16.mxu0 %v3868_v2  ;;  %v3627_v21 = vld [vmem:[%s4830_s3 + $0x48] sm:$0xff]  }
   0x2   :  { %389 = vmatprep.subr.bf16.mxu1 %v3601_v0  ;;  %v3604_v3 = vld [vmem:[%s4828_s1 + $0xa4] ss:$80 sps:$4 sm:$0xff]   ;;  %v3606_v4 = vld [vmem:[%s4828_s1 + $0xa0] ss:$80 sps:$4 sm:$0xff]   ;;  %v3628_v22 = vld [vmem:[%s4830_s3 + $0x8] sm:$0xff]  }
   0x3   :  { %v37_v5 = vld [vmem:[%s4827_s0] sm:$0xff]  ;;  %390 = vmatpush1.bf16.msra.mxu1 %v3603_v1  ;;  %v3629_v23 = vld [vmem:[%s4830_s3 + $0x50] sm:$0xff]   ;;  %v3631_v25 = vld [vmem:[%s4830_s3 + $0x58] sm:$0xff]  }
   0x4   :  { %v3607_v6 = vld [vmem:[%s4828_s1 + $0x24] ss:$80 sps:$4 sm:$0xff]   ;;  %391 = vmatprep.subr.bf16.mxu1 %v3604_v3  ;;  %v3609_v7 = vld [vmem:[%s4828_s1 + $0x20] ss:$80 sps:$4 sm:$0xff]   ;;  %v3953_v9 = vpack.c.bf16 %v37_v5, %v37_v5  ;;  %v3632_v26 = vld [vmem:[%s4830_s3 + $0x18] sm:$0xff]  }
   0x5   :  { %553 = vmatprep.subr.bf16.mxu0 %v3607_v6  ;;  %v3610_v8 = vld [vmem:[%s4828_s1 + $0xc4] ss:$80 sps:$4 sm:$0xff]   ;;  %v3612_v10 = vld [vmem:[%s4828_s1 + $0xc0] ss:$80 sps:$4 sm:$0xff]   ;;  %v3635_v29 = vld [vmem:[%s4830_s3 + $0x68] sm:$0xff]  }
   0x6   :  { %554 = vmatpush1.bf16.msra.mxu0 %v3609_v7  ;;  %v3615_v11 = vld [vmem:[%s4828_s1 + $0x34] ss:$80 sps:$4 sm:$0xff]   ;;  %v3613_v12 = vld [vmem:[%s4828_s1 + $0x30] ss:$80 sps:$4 sm:$0xff]   ;;  %v3636_v30 = vld [vmem:[%s4830_s3 + $0x28] sm:$0xff]  }
   0x7   :  { %392 = vmatpush1.bf16.msra.mxu1 %v3606_v4  ;;  %555 = vmatprep.subr.bf16.mxu0 %v3610_v8  ;;  %v3618_v13 = vld [vmem:[%s4828_s1 + $0xd4] ss:$80 sps:$4 sm:$0xff]   ;;  %v3616_v14 = vld [vmem:[%s4828_s1 + $0xd0] ss:$80 sps:$4 sm:$0xff]   ;;  %v3639_v33 = vld [vmem:[%s4830_s3 + $0x78] sm:$0xff]  }
   0x8   :  { %v3621_v15 = vld [vmem:[%s4828_s1 + $0x44] ss:$80 sps:$4 sm:$0xff]   ;;  %v3619_v16 = vld [vmem:[%s4828_s1 + $0x40] ss:$80 sps:$4 sm:$0xff]   ;;  %v3640_v34 = vld [vmem:[%s4830_s3 + $0x38] sm:$0xff]  }
   0x9   :  { %v3624_v17 = vld [vmem:[%s4828_s1 + $0xe4] ss:$80 sps:$4 sm:$0xff]   ;;  %v3622_v18 = vld [vmem:[%s4828_s1 + $0xe0] ss:$80 sps:$4 sm:$0xff]   ;;  %v3641_v35 = vld [vmem:[%s4828_s1 + $0x8] ss:$80 sps:$4 sm:$0xff]  }
   0xa   :  { %3148 = vmatmul.mubr.msk.bf16.vlgmr.msra.gmra.mrb[0].mxu1 %vm385_vm0, %v3953_v9  ;;  %556 = vmatpush1.bf16.msra.mxu0 %v3612_v10  ;;  %v3625_v19 = vld [vmem:[%s4830_s3 + $0x40] sm:$0xff]   ;;  %v3630_v24 = vld [vmem:[%s4830_s3 + $0x10] sm:$0xff]   ;;  %v3643_v36 = vld [vmem:[%s4828_s1 + $0xc] ss:$80 sps:$4 sm:$0xff]  }
   0xb   :  { %635 = vmatprep.subr.bf16.mxu0 %v3615_v11  ;;  %462 = vmatprep.mubr.bf16.mxu1 %v3868_v2  ;;  %v3626_v20 = vld [vmem:[%s4830_s3] sm:$0xff]   ;;  %v3637_v31 = vld [vmem:[%s4830_s3 + $0x70] sm:$0xff]   ;;  %v3646_v37 = vld [vmem:[%s4828_s1 + $0xac] ss:$80 sps:$4 sm:$0xff]  }
   0xc   :  { %v3633_v27 = vld [vmem:[%s4830_s3 + $0x60] sm:$0xff]   ;;  %v3638_v32 = vld [vmem:[%s4830_s3 + $0x30] sm:$0xff]   ;;  %430 = vmatprep.subr.bf16.mxu1 %v3643_v36  ;;  %v3644_v38 = vld [vmem:[%s4828_s1 + $0xa8] ss:$80 sps:$4 sm:$0xff]  }
   0xd   :  { %3152 = vmatmul.mubr.msk.bf16.vlgmr.msra.gmra.mrb[0].mxu0 %vm385_vm0, %v3953_v9  ;;  %v3634_v28 = vld [vmem:[%s4830_s3 + $0x20] sm:$0xff]   ;;  %431 = vmatpush1.bf16.msra.mxu1 %v3641_v35  ;;  %v3655_v43 = vld [vmem:[%s4828_s1 + $0x1c] ss:$80 sps:$4 sm:$0xff]   ;;  %v3653_v44 = vld [vmem:[%s4828_s1 + $0x18] ss:$80 sps:$4 sm:$0xff]  }
   0xe   :  { %636 = vmatpush1.bf16.msra.mxu0 %v3613_v12  ;;  %667 = vmatprep.mubr.bf16.mxu0 %v3868_v2  ;;  %v3649_v39 = vld [vmem:[%s4828_s1 + $0x14] ss:$80 sps:$4 sm:$0xff]   ;;  %v3647_v40 = vld [vmem:[%s4828_s1 + $0x10] ss:$80 sps:$4 sm:$0xff]   ;;  %v3658_v45 = vld [vmem:[%s4828_s1 + $0xbc] ss:$80 sps:$4 sm:$0xff]  }
   0xf   :  { %637 = vmatprep.subr.bf16.mxu0 %v3618_v13  ;;  %432 = vmatprep.subr.bf16.mxu1 %v3646_v37  ;;  %v3652_v41 = vld [vmem:[%s4828_s1 + $0xb4] ss:$80 sps:$4 sm:$0xff]   ;;  %v3650_v42 = vld [vmem:[%s4828_s1 + $0xb0] ss:$80 sps:$4 sm:$0xff]   ;;  %v3656_v46 = vld [vmem:[%s4828_s1 + $0xb8] ss:$80 sps:$4 sm:$0xff]  }
  0x10   :  { %v3661_v47 = vld [vmem:[%s4828_s1 + $0x2c] ss:$80 sps:$4 sm:$0xff]   ;;  %v3659_v48 = vld [vmem:[%s4828_s1 + $0x28] ss:$80 sps:$4 sm:$0xff]  }
  0x11   :  { %433 = vmatpush1.bf16.msra.mxu1 %v3644_v38 }
  0x12   :  { %638 = vmatpush1.bf16.msra.mxu0 %v3616_v14  ;;  %471 = vmatprep.subr.bf16.mxu1 %v3649_v39 }
  0x13   :  { %717 = vmatprep.subr.bf16.mxu0 %v3621_v15 }
  0x14   :  { %3149 = vmatmul.mubr.msk.bf16.vlgmr.msra.gmra.mrb[4].mxu1 %vm385_vm0, %v3953_v9 }
  0x15   :  { %3154 = vmatmul.mubr.msk.bf16.vlgmr.msra.gmra.mrb[4].mxu0 %vm385_vm0, %v3953_v9  ;;  %472 = vmatpush1.bf16.msra.mxu1 %v3647_v40 }
  0x16   :  { %718 = vmatpush1.bf16.msra.mxu0 %v3619_v16  ;;  %749 = vmatprep.mubr.bf16.mxu0 %v3868_v2 }
  0x17   :  { %719 = vmatprep.subr.bf16.mxu0 %v3624_v17  ;;  %503 = vmatprep.mubr.bf16.mxu1 %v3868_v2 }
  0x18   :  { %473 = vmatprep.subr.bf16.mxu1 %v3652_v41 }
  0x19   :  { %474 = vmatpush1.bf16.msra.mxu1 %v3650_v42 }
  0x1a   :  { %720 = vmatpush1.bf16.msra.mxu0 %v3622_v18  ;;  %512 = vmatprep.subr.bf16.mxu1 %v3655_v43 }
  0x1b   :  { %3358 = vmatprep.subr.bf16.mxu0 %v3625_v19 }
  0x1c   :  { %3150 = vmatmul.mubr.msk.bf16.vlgmr.msra.gmra.mrb[8].mxu1 %vm385_vm0, %v3953_v9 }
  0x1d   :  { %3156 = vmatmul.mubr.msk.bf16.vlgmr.msra.gmra.mrb[8].mxu0 %vm385_vm0, %v3953_v9  ;;  %513 = vmatpush1.bf16.msra.mxu1 %v3653_v44 }
  0x1e   :  { %3359 = vmatpush3.bf16.msra.mxu0 %v3626_v20  ;;  %544 = vmatprep.mubr.bf16.mxu1 %v3868_v2 }
  0x1f   :  { %3360 = vmatprep.subr.bf16.mxu0 %v3627_v21  ;;  %514 = vmatprep.subr.bf16.mxu1 %v3658_v45 }
  0x21   :  { %515 = vmatpush1.bf16.msra.mxu1 %v3656_v46 }
  0x22   :  { %3361 = vmatpush3.bf16.msra.mxu0 %v3628_v22 }
  0x23   :  { %3362 = vmatprep.subr.bf16.mxu0 %v3629_v23 }
  0x26   :  { %3363 = vmatpush3.bf16.msra.mxu0 %v3630_v24 }
  0x27   :  { %3364 = vmatprep.subr.bf16.mxu0 %v3631_v25 }
  0x2a   :  { %3365 = vmatpush3.bf16.msra.mxu0 %v3632_v26 }
  0x2b   :  { %3366 = vmatprep.subr.bf16.mxu0 %v3633_v27 }
  0x2e   :  { %3367 = vmatpush3.bf16.msra.mxu0 %v3634_v28 }
  0x2f   :  { %3368 = vmatprep.subr.bf16.mxu0 %v3635_v29 }
  0x32   :  { %3369 = vmatpush3.bf16.msra.mxu0 %v3636_v30 }
  0x33   :  { %3370 = vmatprep.subr.bf16.mxu0 %v3637_v31 }
  0x36   :  { %3371 = vmatpush3.bf16.msra.mxu0 %v3638_v32 }
  0x37   :  { %3372 = vmatprep.subr.bf16.mxu0 %v3639_v33 }
  0x3a   :  { %3373 = vmatpush3.bf16.msra.mxu0 %v3640_v34 }
  0x3b   :  { %15 = vsyncpa [#allocation3], 0  ;;  %594 = vmatprep.subr.bf16.mxu1 %v3661_v47  ;;  %3151 = vmatmul.mubr.msk.bf16.vlgmr.msra.gmra.mrb[12].mxu1 %vm385_vm0, %v3953_v9  ;;  %v85_v49 = vlaneseq  ;;  %v4100_v52 = vld [vmem:[%s4829_s2] sm:$0xff]  ;;  %v4109_v56 = vld [vmem:[%s4829_s2 + $0x8] sm:$0xff]  ;;  %vm1059_vm1 = vcmask 1043456   ;;  %vm1055_vm2 = vcmask 64512  }
  0x3c   :  { %595 = vmatpush1.bf16.msra.mxu1 %v3659_v48  ;;  %626 = vmatprep.mubr.bf16.mxu1 %v3868_v2  ;;  %v4128_v18 = vld [vmem:[%s4829_s2 + $0x10] sm:$0xf]  ;;  %v3664_v25 = vld [vmem:[%s4828_s1 + $0xcc] ss:$80 sps:$4 sm:$0xff]   ;;  %v3662_v26 = vld [vmem:[%s4828_s1 + $0xc8] ss:$80 sps:$4 sm:$0xff]  }
  0x3d   :  { %v4092_v50 = vshrl.u32 %v85_v49, 7  ;;  %596 = vmatprep.subr.bf16.mxu1 %v3664_v25  ;;  %v3667_v27 = vld [vmem:[%s4828_s1 + $0x3c] ss:$80 sps:$4 sm:$0xff]   ;;  %v3665_v28 = vld [vmem:[%s4828_s1 + $0x38] ss:$80 sps:$4 sm:$0xff]   ;;  %v1003_v35 = vld [vmem:[%s4832_s5] sm:$0xff] }
  0x3e   :  { %v3670_v29 = vld [vmem:[%s4828_s1 + $0xdc] ss:$80 sps:$4 sm:$0xff]   ;;  %v3668_v30 = vld [vmem:[%s4828_s1 + $0xd8] ss:$80 sps:$4 sm:$0xff]   ;;  %v1007_v36 = vld [vmem:[%s4832_s5 + $0x20] sm:$0xff]  ;;  %v3177_v37 = vcombine.high %v1003_v35, %v1003_v35  ;;  %v3176_v38 = vcombine.low %v1003_v35, %v1003_v35  ;;  %vm3870_vm3 = vmmov 0  }
  0x3f   :  { %v4095_v51 = vsub.s32 0, %v4092_v50  ;;  %v91_v53 = vsub.s32 1, %v4092_v50  ;;  %v103_v5 = vsub.s32 4, %v4092_v50  ;;  %v3673_v31 = vld [vmem:[%s4828_s1 + $0x4c] ss:$80 sps:$4 sm:$0xff]   ;;  %v3185_v39 = vcombine.high %v1007_v36, %v1007_v36  ;;  %v1009_v44 = vld [vmem:[%s4832_s5 + $0x30] sm:$0xff] }
  0x40   :  { %597 = vmatpush1.bf16.msra.mxu1 %v3662_v26  ;;  %v3671_v32 = vld [vmem:[%s4828_s1 + $0x48] ss:$80 sps:$4 sm:$0xff]   ;;  %v3676_v33 = vld [vmem:[%s4828_s1 + $0xec] ss:$80 sps:$4 sm:$0xff]   ;;  %v3184_v40 = vcombine.low %v1007_v36, %v1007_v36  ;;  %v1061_v41 = vsel %vm1059_vm1, %v3176_v38, 0  ;;  %v3189_v45 = vcombine.high %v1009_v44, %v1009_v44  ;;  %v4193_v46 = vsub.s32 2, %v4092_v50 }
  0x41   :  { %v88_v54 = vrot.slane %v4100_v52, %v4095_v51  ;;  %v92_v55 = vrot.slane %v4100_v52, %v91_v53  ;;  %v124_v60 = vrot.slane %v4109_v56, %v91_v53  ;;  %v136_v12 = vrot.slane %v4109_v56, %v103_v5  ;;  %676 = vmatprep.subr.bf16.mxu1 %v3667_v27  ;;  %v3674_v34 = vld [vmem:[%s4828_s1 + $0xe8] ss:$80 sps:$4 sm:$0xff]   ;;  %v1005_v26 = vld [vmem:[%s4832_s5 + $0x10] sm:$0xff]  ;;  %s3871_s3 = smov [#allocation2]  }
  0x42   :  { %v156_v19 = vrot.slane %v4128_v18, %v91_v53  ;;  %3201 = vmatprep.subr.msk.bf16.mxu0 %vm1059_vm1, %v3185_v39  ;;  %v1004_v42 = vld [vmem:[%s4832_s5 + $0x8] sm:$0xff]  ;;  %v4196_v48 = vsub.s32 3, %v4092_v50  ;;  %v96_v53 = vrot.slane %v4100_v52, %v4193_v46  ;;  %v3188_v25 = vcombine.low %v1009_v44, %v1009_v44  ;;  %v1006_v35 = vld [vmem:[%s4832_s5 + $0x18] sm:$0xff]  ;;  %v3699_v39 = vld [vmem:[%s4833_s6 + $0xc0] sm:$0xff]   ;;  %s3100_s24 = sshll.u32 %s3871_s3, 4  ;;  %s3101_s24 = int_to_ptr.vmem [resolvable:$true] %s3100_s24 }
  0x43   :  { %3153 = vmatmul.mubr.msk.bf16.vlgmr.msra.gmra.mrb[16].mxu1 %vm385_vm0, %v3953_v9  ;;  %v3179_v43 = vcombine.high %v1004_v42, %v1004_v42  ;;  %v3183_v38 = vcombine.high %v1006_v35, %v1006_v35  ;;  %v3703_v44 = vld [vmem:[%s4833_s6 + $0xc8] sm:$0xff]   ;;  %s3844_s25 = scalar_lea.vmem %s3101_s24, 128  ;;  %p3849_p1 = scmp.lt.s32.totalorder %s3101_s24, %s3101_s24 }
  0x44   :  { %677 = vmatpush1.bf16.msra.mxu1 %v3665_v28  ;;  %708 = vmatprep.mubr.bf16.mxu1 %v3868_v2  ;;  %p3845_p0 = scmp.ne.s32.totalorder %s3101_s24, %s3844_s25  ;;  %p3850_p2 = scmp.lt.s32.totalorder %s3844_s25, %s3844_s25 }
  0x45   :  { %678 = vmatprep.subr.bf16.mxu1 %v3670_v29 }
  0x46   :  { %p3851_p3 = por %p3850_p2, %p3849_p1 }
  0x48   :  { %679 = vmatpush1.bf16.msra.mxu1 %v3668_v30  ;;  %v1097_v30 = vsel %vm1059_vm1, %v3188_v25, 0  ;;  %v3710_v25 = vld [vmem:[%s4833_s6 + $0x68] sm:$0xff]   ;;  %p3852_p4 = pnand %p3851_p3, %p3845_p0 }
  0x49   :  { %758 = vmatprep.subr.bf16.mxu1 %v3673_v31  ;;  %v3181_v31 = vcombine.high %v1005_v26, %v1005_v26 }
  0x4b   :  { %3155 = vmatmul.mubr.msk.bf16.vlgmr.msra.gmra.mrb[20].mxu1 %vm385_vm0, %v3953_v9 }
  0x4c   :  { %759 = vmatpush1.bf16.msra.mxu1 %v3671_v32  ;;  %790 = vmatprep.mubr.bf16.mxu1 %v3868_v2  ;;  %v3180_v32 = vcombine.low %v1005_v26, %v1005_v26 }
  0x4d   :  { %760 = vmatprep.subr.bf16.mxu1 %v3676_v33  ;;  %v3687_v33 = vld [vmem:[%s4832_s5 + $0x40] ss:$0 sps:$4 sm:$0xff]  }
  0x4e   :  { %v1073_v36 = vsel %vm1059_vm1, %v3180_v32, 0 }
  0x50   :  { %761 = vmatpush1.bf16.msra.mxu1 %v3674_v34  ;;  %v3869_v34 = vmov 0.0  }
  0x51   :  { %3193 = vmatprep.subr.msk.bf16.mxu1 %vm1059_vm1, %v3177_v37  ;;  %v1109_v37 = vsel %vm1059_vm1, %v3687_v33, 0 }
  0x53   :  { %3157 = vmatmul.mubr.msk.bf16.vlgmr.msra.gmra.mrb[24].mxu1 %vm385_vm0, %v3953_v9  ;;  %v1085_v9 = vsel %vm1059_vm1, %v3184_v40, 0  ;;  %v3182_v40 = vcombine.low %v1006_v35, %v1006_v35  ;;  %v3716_v35 = vld [vmem:[%s4833_s6 + $0x30] sm:$0xff]  }
  0x54   :  { %1143 = vmatprep.mubr.bf16.mxu1 %v3868_v2  ;;  %1112 = vmatpush1.bf16.msra.mxu1 %v1061_v41  ;;  %v1008_v41 = vld [vmem:[%s4832_s5 + $0x28] sm:$0xff] }
  0x55   :  { %3195 = vmatprep.subr.msk.bf16.mxu1 %vm1059_vm1, %v3179_v43  ;;  %v3701_v43 = vld [vmem:[%s4833_s6 + $0x80] sm:$0xff]  }
  0xdd   :  { %v423_v57 = vpop.f32.mrb[0].mxu1 }
  0xde   :  { %v424_v58 = vadd.f32 %v423_v57, %v88_v54  ;;  %v425_v59 = vpop.f32.mrb[1].mxu1  ;;  %v100_v54 = vrot.slane %v4100_v52, %v4196_v48 }
  0xdf   :  { %v426_v61 = vadd.f32 %v425_v59, %v92_v55  ;;  %v427_v62 = vpop.f32.mrb[2].mxu1 }
  0xe0   :  { %v799_v63 = vmax.f32 %v424_v58, 0.0  ;;  %v428_v0 = vpop.f32.mrb[3].mxu1  ;;  %v4112_v1 = vpop.f32.mrb[0].mxu0 }
  0xe1   :  { %v800_v3 = vmax.f32 %v426_v61, 0.0  ;;  %v589_v4 = vpop.f32.mrb[1].mxu0 }
  0xe2   :  { %v4115_v6 = vadd.f32 %v589_v4, %v124_v60  ;;  %v591_v7 = vpop.f32.mrb[2].mxu0  ;;  %v819_v11 = vpack.c.bf16 %v799_v63, %v799_v63 }
  0xe3   :  { %v820_v8 = vpack.c.bf16 %v800_v3, %v800_v3  ;;  %v592_v10 = vpop.f32.mrb[3].mxu0 }
  0xe4   :  { %v3158_v10 = vld [vmem:[%s4831_s4] ss:$0 sm:$0xff] }
  0xe5   :  { %988 = vmatprep.mubr.bf16.mxu0 %v820_v8 }
  0xe6   :  { %989 = vmatmul.mubr.bf16.vlgmr.msra.gmra.mrb[12].mxu0 %v819_v11 }
  0xe7   :  { %1307 = vmatprep.mubr.bf16.mxu0 %v3868_v2  ;;  %1276 = vmatpush1.bf16.msra.mxu0 %v1085_v9  ;;  %v464_v47 = vpop.f32.mrb[4].mxu1  ;;  %v1079_v9 = vsel %vm1059_vm1, %v3182_v40, 0 }
  0xe8   :  { %v669_v13 = vpop.f32.mrb[4].mxu0  ;;  %3205 = vmatprep.subr.msk.bf16.mxu0 %vm1059_vm1, %v3189_v45  ;;  %v466_v49 = vpop.f32.mrb[5].mxu1  ;;  %v4202_v58 = vadd.f32 %v464_v47, %v96_v53  ;;  %v3186_v45 = vcombine.low %v1008_v41, %v1008_v41  ;;  %v3705_v47 = vld [vmem:[%s4833_s6 + $0x88] sm:$0xff]   ;;  %v3707_v53 = vld [vmem:[%s4833_s6 + $0xd0] sm:$0xff]  }
  0xe9   :  { %v4121_v14 = vadd.f32 %v669_v13, %v136_v12  ;;  %v4123_v15 = vpop.f32.mrb[5].mxu0  ;;  %v468_v55 = vpop.f32.mrb[6].mxu1  ;;  %v4204_v59 = vadd.f32 %v466_v49, %v100_v54  ;;  %v1010_v49 = vld [vmem:[%s4832_s5 + $0x38] sm:$0xff] }
  0xea   :  { %v673_v16 = vpop.f32.mrb[6].mxu0  ;;  %v469_v57 = vpop.f32.mrb[7].mxu1  ;;  %v1091_v54 = vsel %vm1059_vm1, %v3186_v45, 0  ;;  %v3191_v55 = vcombine.high %v1010_v49, %v1010_v49 }
  0xeb   :  { %v674_v17 = vpop.f32.mrb[7].mxu0  ;;  %v3709_v57 = vld [vmem:[%s4833_s6 + $0x90] sm:$0xff]  }
  0xef   :  { %v4206_v60 = vpop.f32.mrb[8].mxu1 }
  0xf0   :  { %v4131_v20 = vpop.f32.mrb[8].mxu0  ;;  %v4208_v61 = vpop.f32.mrb[9].mxu1 }
  0xf1   :  { %v753_v21 = vpop.f32.mrb[9].mxu0  ;;  %v509_v62 = vpop.f32.mrb[10].mxu1 }
  0xf2   :  { %v4133_v22 = vadd.f32 %v753_v21, %v156_v19  ;;  %v755_v23 = vpop.f32.mrb[10].mxu0  ;;  %v510_v63 = vpop.f32.mrb[11].mxu1  ;;  %v3711_v62 = vld [vmem:[%s4833_s6 + $0xd8] sm:$0xff]  }
  0xf3   :  { %v756_v24 = vpop.f32.mrb[11].mxu0  ;;  %v3190_v63 = vcombine.low %v1010_v49, %v1010_v49  ;;  %v3719_v49 = vld [vmem:[%s4833_s6 + $0xe8] sm:$0xff]  }
  0xf4   :  { %v3178_v24 = vcombine.low %v1004_v42, %v1004_v42  ;;  %v3187_v42 = vcombine.high %v1008_v41, %v1008_v41  ;;  %v160_v41 = vrot.slane %v4128_v18, %v4193_v46 }
  0xf6   :  { %v1067_v29 = vsel %vm1059_vm1, %v3178_v24, 0  ;;  %v3708_v24 = vld [vmem:[%s4833_s6 + $0x20] sm:$0xff]  }
 0x10e   :  { %v4210_v0 = vpop.f32.mrb[12].mxu1 }
 0x10f   :  { %v4212_v3 = vpop.f32.mrb[13].mxu1 }
 0x110   :  { %v550_v4 = vpop.f32.mrb[14].mxu1 }
 0x111   :  { %v551_v7 = vpop.f32.mrb[15].mxu1  ;;  %v3713_v4 = vld [vmem:[%s4833_s6 + $0x98] sm:$0xff]  }
 0x112   :  { %v3715_v7 = vld [vmem:[%s4833_s6 + $0xe0] sm:$0xff]  }
 0x116   :  { %v4335_v26 = vpop.f32.mrb[16].mxu1 }
 0x1b9   :  { %v3374_v8 = vpop.f32.mrb[12].mxu0 }
 0x1ba   :  { %v3375_v11 = vpop.f32.mrb[13].mxu0 }
 0x1bb   :  { %v3376_v12 = vadd.f32 %v3375_v11, %v3374_v8  ;;  %v3377_v13 = vpop.f32.mrb[14].mxu0  ;;  %v1103_v8 = vsel %vm1059_vm1, %v3190_v63, 0  ;;  %v3717_v11 = vld [vmem:[%s4833_s6 + $0xa0] sm:$0xff]   ;;  %v3726_v63 = vld [vmem:[%s4833_s6 + $0xf8] sm:$0xff]  }
 0x1bc   :  { %v3378_v16 = vpop.f32.mrb[15].mxu0  ;;  %v3696_v13 = vld [vmem:[%s4833_s6 + $0x48] sm:$0xff]  }
 0x1bd   :  { %v991_v17 = vadd.f32 %v3376_v12, %v3158_v10  ;;  %v3694_v10 = vld [vmem:[%s4833_s6 + $0x40] sm:$0xff]   ;;  %v3697_v16 = vld [vmem:[%s4833_s6 + $0x8] sm:$0xff]  }
 0x1be   :  { %v3695_v12 = vld [vmem:[%s4833_s6] sm:$0xff]  }
 0x1bf   :  { %v3175_v19 = vmul.f32 -1.442695, %v991_v17  ;;  %v3700_v17 = vld [vmem:[%s4833_s6 + $0x10] sm:$0xff]  }
 0x1c1   :  { %3840 = vpow2.f32 %v3175_v19  ;;  %v3702_v19 = vld [vmem:[%s4833_s6 + $0x58] sm:$0xff]  }
 0x1cb   :  { %v3841_v21 = vpop.eup %3840 }
 0x1cc   :  { %v999_v23 = vadd.f32 1.0, %v3841_v21  ;;  %v3704_v21 = vld [vmem:[%s4833_s6 + $0x18] sm:$0xff]  }
 0x1ce   :  { %3842 = vrcp.f32 %v999_v23  ;;  %v3706_v23 = vld [vmem:[%s4833_s6 + $0x60] sm:$0xff]  }
 0x1d8   :  { %v3843_v27 = vpop.eup %3842 }
 0x1d9   :  { %v4220_v28 = vpack.c.bf16 %v3843_v27, %v3843_v27  ;;  %v4337_v27 = vpop.f32.mrb[17].mxu1 }
 0x1db   :  { %3194 = vmatmul.mubr.msk.bf16.vlgmr.msra.gmra.mrb[28].mxu1 %vm1055_vm2, %v4220_v28  ;;  %3202 = vmatmul.mubr.msk.bf16.vlgmr.msra.gmra.mrb[16].mxu0 %vm1055_vm2, %v4220_v28 }
 0x1dc   :  { %1153 = vmatpush1.bf16.msra.mxu1 %v1067_v29  ;;  %1358 = vmatpush1.bf16.msra.mxu0 %v1097_v30  ;;  %v632_v29 = vpop.f32.mrb[18].mxu1  ;;  %v3714_v30 = vld [vmem:[%s4833_s6 + $0x70] sm:$0xff]  }
 0x1dd   :  { %1184 = vmatprep.mubr.bf16.mxu1 %v3868_v2  ;;  %1389 = vmatprep.mubr.bf16.mxu0 %v3868_v2  ;;  %v633_v32 = vpop.f32.mrb[19].mxu1 }
 0x1de   :  { %3197 = vmatprep.subr.msk.bf16.mxu1 %vm1059_vm1, %v3181_v31  ;;  %3583 = vmatprep.subr.bf16.mxu0 %v3869_v34  ;;  %v111_v31 = vsub.s32 6, %v4092_v50 }
 0x1e0   :  { %v144_v33 = vrot.slane %v4109_v56, %v111_v31 }
 0x1e3   :  { %3196 = vmatmul.mubr.msk.bf16.vlgmr.msra.gmra.mrb[32].mxu1 %vm1055_vm2, %v4220_v28  ;;  %3206 = vmatmul.mubr.msk.bf16.vlgmr.msra.gmra.mrb[20].mxu0 %vm1055_vm2, %v4220_v28 }
 0x1e4   :  { %1194 = vmatpush1.bf16.msra.mxu1 %v1073_v36  ;;  %3584 = vmatpush3.bf16.msra.mxu0 %v1109_v37  ;;  %v710_v36 = vpop.f32.mrb[20].mxu1 }
 0x1e5   :  { %1225 = vmatprep.mubr.bf16.mxu1 %v3868_v2  ;;  %3585 = vmatprep.mubr.msk.bf16.mxu0 %vm3870_vm3, %v3869_v34  ;;  %v4350_v37 = vadd.f32 %v710_v36, %v144_v33 }
 0x1e6   :  { %3199 = vmatprep.subr.msk.bf16.mxu1 %vm1059_vm1, %v3183_v38  ;;  %3404 = vmatprep.subr.bf16.mxu0 %v3699_v39  ;;  %v4352_v38 = vpop.f32.mrb[21].mxu1 }
 0x1e7   :  { %v714_v39 = vpop.f32.mrb[22].mxu1 }
 0x1e8   :  { %v715_v40 = vpop.f32.mrb[23].mxu1 }
 0x1eb   :  { %3198 = vmatmul.mubr.msk.bf16.vlgmr.msra.gmra.mrb[36].mxu1 %vm1055_vm2, %v4220_v28  ;;  %3586 = vmatmul.mubr.msk.bf16.vlgmr.msra.gmra.mrb[24].mxu0 %vm1055_vm2, %v4220_v28 }
 0x1ec   :  { %1235 = vmatpush1.bf16.msra.mxu1 %v1079_v9  ;;  %1266 = vmatprep.mubr.bf16.mxu1 %v3868_v2  ;;  %v792_v9 = vpop.f32.mrb[24].mxu1 }
 0x1ed   :  { %3203 = vmatprep.subr.msk.bf16.mxu1 %vm1059_vm1, %v3187_v42  ;;  %3405 = vmatpush3.bf16.msra.mxu0 %v3701_v43  ;;  %v4356_v42 = vadd.f32 %v792_v9, %v160_v41  ;;  %v4358_v43 = vpop.f32.mrb[25].mxu1 }
 0x1ee   :  { %3406 = vmatprep.subr.bf16.mxu0 %v3703_v44  ;;  %v796_v44 = vpop.f32.mrb[26].mxu1 }
 0x1ef   :  { %v797_v45 = vpop.f32.mrb[27].mxu1  ;;  %v3725_v44 = vld [vmem:[%s4833_s6 + $0x100] sm:$0xff]  }
 0x1f1   :  { %3407 = vmatpush3.bf16.msra.mxu0 %v3705_v47  ;;  %v3718_v47 = vld [vmem:[%s4833_s6 + $0x78] sm:$0xff]  }
 0x1f2   :  { %3408 = vmatprep.subr.bf16.mxu0 %v3707_v53  ;;  %v3720_v53 = vld [vmem:[%s4833_s6 + $0x38] sm:$0xff]  }
 0x1f3   :  { %3200 = vmatmul.mubr.msk.bf16.vlgmr.msra.gmra.mrb[40].mxu1 %vm1055_vm2, %v4220_v28 }
 0x1f4   :  { %1317 = vmatpush1.bf16.msra.mxu1 %v1091_v54  ;;  %1348 = vmatprep.mubr.bf16.mxu1 %v3868_v2  ;;  %v3721_v54 = vld [vmem:[%s4833_s6 + $0xa8] sm:$0xff]  }
 0x1f5   :  { %3207 = vmatprep.subr.msk.bf16.mxu1 %vm1059_vm1, %v3191_v55  ;;  %3409 = vmatpush3.bf16.msra.mxu0 %v3709_v57  ;;  %v3722_v55 = vld [vmem:[%s4833_s6 + $0xf0] sm:$0xff]   ;;  %v3723_v57 = vld [vmem:[%s4833_s6 + $0x140] sm:$0xff]  }
 0x1f6   :  { %3410 = vmatprep.subr.bf16.mxu0 %v3711_v62  ;;  %v3724_v62 = vld [vmem:[%s4833_s6 + $0xb0] sm:$0xff]  }
 0x1f9   :  { %3411 = vmatpush3.bf16.msra.mxu0 %v3713_v4  ;;  %v3728_v4 = vld [vmem:[%s4833_s6 + $0xb8] sm:$0xff]  }
 0x1fa   :  { %3412 = vmatprep.subr.bf16.mxu0 %v3715_v7  ;;  %v3731_v7 = vld [vmem:[%s4833_s6 + $0x1c0] sm:$0xff]  }
 0x1fb   :  { %3204 = vmatmul.mubr.msk.bf16.vlgmr.msra.gmra.mrb[44].mxu1 %vm1055_vm2, %v4220_v28 }
 0x1fc   :  { %1399 = vmatpush1.bf16.msra.mxu1 %v1103_v8  ;;  %1430 = vmatprep.mubr.bf16.mxu1 %v3868_v2  ;;  %v3698_v2 = vld [vmem:[%s4833_s6 + $0x50] sm:$0xff]   ;;  %v107_v8 = vsub.s32 5, %v4092_v50 }
 0x1fd   :  { %3382 = vmatprep.subr.bf16.mxu1 %v3694_v10  ;;  %3413 = vmatpush3.bf16.msra.mxu0 %v3717_v11  ;;  %v104_v10 = vrot.slane %v4100_v52, %v103_v5  ;;  %v112_v5 = vrot.slane %v4100_v52, %v111_v31 }
 0x1fe   :  { %3414 = vmatprep.subr.bf16.mxu0 %v3719_v49  ;;  %v140_v11 = vrot.slane %v4109_v56, %v107_v8 }
 0x1ff   :  { %v547_v39 = vadd.f32 %v4210_v0, %v112_v5  ;;  %v3734_v5 = vld [vmem:[%s4833_s6 + $0x158] sm:$0xff]  }
 0x201   :  { %3415 = vmatpush3.bf16.msra.mxu0 %v3721_v54  ;;  %v805_v0 = vmax.f32 %v547_v39, 0.0 }
 0x202   :  { %3416 = vmatprep.subr.bf16.mxu0 %v3722_v55 }
 0x203   :  { %3208 = vmatmul.mubr.msk.bf16.vlgmr.msra.gmra.mrb[48].mxu1 %vm1055_vm2, %v4220_v28  ;;  %v3712_v28 = vld [vmem:[%s4833_s6 + $0x28] sm:$0xff]  }
 0x204   :  { %3383 = vmatpush3.bf16.msra.mxu1 %v3695_v12  ;;  %v108_v12 = vrot.slane %v4100_v52, %v107_v8 }
 0x205   :  { %3384 = vmatprep.subr.bf16.mxu1 %v3696_v13  ;;  %3417 = vmatpush3.bf16.msra.mxu0 %v3724_v62  ;;  %v506_v13 = vadd.f32 %v4206_v60, %v104_v10 }
 0x206   :  { %3418 = vmatprep.subr.bf16.mxu0 %v3726_v63 }
 0x208   :  { %3385 = vmatpush3.bf16.msra.mxu1 %v3697_v16  ;;  %v672_v16 = vadd.f32 %v4123_v15, %v140_v11 }
 0x209   :  { %3386 = vmatprep.subr.bf16.mxu1 %v3698_v2  ;;  %3419 = vmatpush3.bf16.msra.mxu0 %v3728_v4  ;;  %v508_v2 = vadd.f32 %v4208_v61, %v108_v12 }
 0x20a   :  { %3448 = vmatprep.subr.bf16.mxu0 %v3731_v7 }
 0x20c   :  { %3387 = vmatpush3.bf16.msra.mxu1 %v3700_v17  ;;  %v115_v17 = vsub.s32 7, %v4092_v50  ;;  %v3746_v50 = vld [vmem:[%s4833_s6 + $0x170] sm:$0xff]  }
 0x20d   :  { %3388 = vmatprep.subr.bf16.mxu1 %v3702_v19  ;;  %v811_v19 = vmax.f32 %v4121_v14, 0.0 }
 0x20e   :  { %v116_v60 = vrot.slane %v4100_v52, %v115_v17 }
 0x210   :  { %3389 = vmatpush3.bf16.msra.mxu1 %v3704_v21  ;;  %v152_v21 = vrot.slane %v4128_v18, %v4095_v51  ;;  %v549_v52 = vadd.f32 %v4212_v3, %v116_v60  ;;  %v808_v60 = vmax.f32 %v4115_v6, 0.0 }
 0x211   :  { %3390 = vmatprep.subr.bf16.mxu1 %v3706_v23  ;;  %v803_v23 = vmax.f32 %v506_v13, 0.0 }
 0x212   :  { %v752_v31 = vadd.f32 %v4131_v20, %v152_v21  ;;  %v120_v20 = vrot.slane %v4109_v56, %v4095_v51  ;;  %v806_v3 = vmax.f32 %v549_v52, 0.0  ;;  %v3730_v51 = vld [vmem:[%s4833_s6 + $0x150] sm:$0xff]   ;;  %v3733_v21 = vld [vmem:[%s4833_s6 + $0x180] sm:$0xff]  }
 0x214   :  { %3391 = vmatpush3.bf16.msra.mxu1 %v3708_v24  ;;  %v812_v24 = vmax.f32 %v672_v16, 0.0  ;;  %v815_v49 = vmax.f32 %v752_v31, 0.0  ;;  %v588_v12 = vadd.f32 %v4112_v1, %v120_v20  ;;  %v3735_v1 = vld [vmem:[%s4833_s6 + $0x1c8] sm:$0xff]   ;;  %v3741_v20 = vld [vmem:[%s4833_s6 + $0x190] sm:$0xff]  }
 0x215   :  { %3392 = vmatprep.subr.bf16.mxu1 %v3710_v25  ;;  %v804_v25 = vmax.f32 %v508_v2, 0.0 }
 0x218   :  { %3393 = vmatpush3.bf16.msra.mxu1 %v3712_v28 }
 0x219   :  { %3394 = vmatprep.subr.bf16.mxu1 %v3714_v30 }
 0x21c   :  { %3395 = vmatpush3.bf16.msra.mxu1 %v3716_v35 }
 0x21d   :  { %3396 = vmatprep.subr.bf16.mxu1 %v3718_v47  ;;  %v3727_v47 = vld [vmem:[%s4833_s6 + $0x148] sm:$0xff]  }
 0x220   :  { %3397 = vmatpush3.bf16.msra.mxu1 %v3720_v53  ;;  %v816_v53 = vmax.f32 %v4133_v22, 0.0 }
 0x221   :  { %3426 = vmatprep.subr.bf16.mxu1 %v3723_v57  ;;  %v3729_v57 = vld [vmem:[%s4833_s6 + $0x108] sm:$0xff]  }
 0x2ae   :  { %v1145_v28 = vpop.f32.mrb[28].mxu1  ;;  %v1309_v15 = vpop.f32.mrb[16].mxu0 }
 0x2af   :  { %v1479_v29 = vmul.f32 %v1145_v28, %v803_v23  ;;  %v4407_v61 = vmul.f32 %v1309_v15, %v811_v19  ;;  %v1147_v30 = vpop.f32.mrb[29].mxu1  ;;  %v1311_v32 = vpop.f32.mrb[17].mxu0  ;;  %v3732_v19 = vld [vmem:[%s4833_s6 + $0x110] sm:$0xff]   ;;  %v132_v28 = vrot.slane %v4109_v56, %v4196_v48 }
 0x2b0   :  { %v1480_v14 = vmul.f32 %v1147_v30, %v804_v25  ;;  %v4409_v33 = vmul.f32 %v1311_v32, %v812_v24  ;;  %v1149_v35 = vpop.f32.mrb[30].mxu1  ;;  %v1313_v36 = vpop.f32.mrb[18].mxu0  ;;  %v807_v24 = vmax.f32 %v588_v12, 0.0  ;;  %v128_v25 = vrot.slane %v4109_v56, %v4193_v46  ;;  %v3736_v30 = vld [vmem:[%s4833_s6 + $0x118] sm:$0xff]   ;;  %v3737_v32 = vld [vmem:[%s4833_s6 + $0x188] sm:$0xff]  }
 0x2b1   :  { %v1150_v40 = vpop.f32.mrb[31].mxu1  ;;  %v1314_v41 = vpop.f32.mrb[19].mxu0  ;;  %v1495_v45 = vpack.c.bf16 %v1479_v29, %v1479_v29  ;;  %v3738_v35 = vld [vmem:[%s4833_s6 + $0x160] sm:$0xff]   ;;  %v3739_v36 = vld [vmem:[%s4833_s6 + $0x1d0] sm:$0xff]   ;;  %v3750_v12 = vld [vmem:[%s4833_s6 + $0x178] sm:$0xff]  }
 0x2b2   :  { %v1496_v9 = vpack.c.bf16 %v1480_v14, %v1480_v14  ;;  %v629_v41 = vadd.f32 %v4335_v26, %v128_v25  ;;  %v3742_v26 = vld [vmem:[%s4833_s6 + $0x168] sm:$0xff]  }
 0x2b4   :  { %2567 = vmatprep.mubr.bf16.mxu1 %v1496_v9 }
 0x2b5   :  { %2568 = vmatmul.mubr.bf16.vlgmr.msra.gmra.mrb[52].mxu1 %v1495_v45 }
 0x2b6   :  { %3427 = vmatpush3.bf16.msra.mxu1 %v3725_v44  ;;  %v1186_v54 = vpop.f32.mrb[32].mxu1  ;;  %v1391_v55 = vpop.f32.mrb[20].mxu0  ;;  %v631_v44 = vadd.f32 %v4337_v27, %v132_v28  ;;  %v3743_v27 = vld [vmem:[%s4833_s6 + $0x1d8] sm:$0xff]   ;;  %v3756_v28 = vld [vmem:[%s4833_s6 + $0x1b0] sm:$0xff]  }
 0x2b7   :  { %v1481_v62 = vmul.f32 %v1186_v54, %v805_v0  ;;  %v4426_v63 = vmul.f32 %v1391_v55, %v815_v49  ;;  %v1188_v4 = vpop.f32.mrb[33].mxu1  ;;  %v1393_v7 = vpop.f32.mrb[21].mxu0  ;;  %3428 = vmatprep.subr.bf16.mxu1 %v3727_v47  ;;  %v3740_v47 = vld [vmem:[%s4833_s6 + $0x120] sm:$0xff]   ;;  %v809_v49 = vmax.f32 %v629_v41, 0.0  ;;  %v3744_v54 = vld [vmem:[%s4833_s6 + $0x128] sm:$0xff]   ;;  %v3745_v55 = vld [vmem:[%s4833_s6 + $0x198] sm:$0xff]  }
 0x2b8   :  { %v1482_v8 = vmul.f32 %v1188_v4, %v806_v3  ;;  %v4431_v22 = vmul.f32 %v1393_v7, %v816_v53  ;;  %v1190_v10 = vpop.f32.mrb[34].mxu1  ;;  %v1395_v11 = vpop.f32.mrb[22].mxu0  ;;  %v810_v0 = vmax.f32 %v631_v44, 0.0  ;;  %v148_v53 = vrot.slane %v4109_v56, %v115_v17  ;;  %v3747_v56 = vld [vmem:[%s4833_s6 + $0x1e0] sm:$0xff]   ;;  %v3764_v44 = vld [vmem:[%s4833_s6 + $0x210] sm:$0xff]  }
 0x2b9   :  { %v1191_v13 = vpop.f32.mrb[35].mxu1  ;;  %v1396_v16 = vpop.f32.mrb[23].mxu0  ;;  %v1497_v23 = vpack.c.bf16 %v1481_v62, %v1481_v62  ;;  %v3748_v10 = vld [vmem:[%s4833_s6 + $0x130] sm:$0xff]   ;;  %v3749_v11 = vld [vmem:[%s4833_s6 + $0x1a0] sm:$0xff]  }
 0x2ba   :  { %v1498_v2 = vpack.c.bf16 %v1482_v8, %v1482_v8  ;;  %3429 = vmatpush3.bf16.msra.mxu1 %v3729_v57  ;;  %v813_v13 = vmax.f32 %v4350_v37, 0.0 }
 0x2bb   :  { %3430 = vmatprep.subr.bf16.mxu1 %v3730_v51  ;;  %v713_v51 = vadd.f32 %v4352_v38, %v148_v53  ;;  %v3751_v38 = vld [vmem:[%s4833_s6 + $0x1e8] sm:$0xff]   ;;  %v3770_v53 = vld [vmem:[%s4833_s6 + $0x260] sm:$0xff]  }
 0x2bc   :  { %2607 = vmatprep.mubr.bf16.mxu0 %v1498_v2  ;;  %v164_v2 = vrot.slane %v4128_v18, %v4196_v48  ;;  %v3754_v18 = vld [vmem:[%s4833_s6 + $0x1f0] sm:$0xff]   ;;  %v3755_v48 = vld [vmem:[%s4833_s6 + $0x240] sm:$0xff]  }
 0x2bd   :  { %2608 = vmatmul.mubr.bf16.vlgmr.msra.gmra.mrb[28].mxu0 %v1497_v23  ;;  %v814_v16 = vmax.f32 %v713_v51, 0.0  ;;  %v3753_v23 = vld [vmem:[%s4833_s6 + $0x1a8] sm:$0xff]   ;;  %v3781_v51 = vld [vmem:[%s4833_s6 + $0x2a0] sm:$0xff]  }
 0x2be   :  { %3431 = vmatpush3.bf16.msra.mxu1 %v3732_v19  ;;  %3449 = vmatpush3.bf16.msra.mxu0 %v3733_v21  ;;  %v1227_v15 = vpop.f32.mrb[36].mxu1  ;;  %v4451_v29 = vpop.f32.mrb[24].mxu0  ;;  %v3752_v21 = vld [vmem:[%s4833_s6 + $0x138] sm:$0xff]  }
 0x2bf   :  { %v4459_v46 = vmul.f32 %v1227_v15, %v807_v24  ;;  %v1229_v14 = vpop.f32.mrb[37].mxu1  ;;  %v3587_v6 = vpop.f32.mrb[25].mxu0  ;;  %3432 = vmatprep.subr.bf16.mxu1 %v3734_v5  ;;  %3450 = vmatprep.subr.bf16.mxu0 %v3735_v1  ;;  %v3757_v15 = vld [vmem:[%s4833_s6 + $0x200] sm:$0xff]  }
 0x2c0   :  { %v1484_v31 = vmul.f32 %v1229_v14, %v808_v60  ;;  %v1231_v39 = vpop.f32.mrb[38].mxu1  ;;  %v1476_v40 = vpop.f32.mrb[26].mxu0  ;;  %v795_v60 = vadd.f32 %v4358_v43, %v164_v2  ;;  %v3759_v43 = vld [vmem:[%s4833_s6 + $0x248] sm:$0xff]   ;;  %v817_v14 = vmax.f32 %v4356_v42, 0.0  ;;  %v1504_v6 = vpack.c.bf16 %v4409_v33, %v4409_v33  ;;  %v3762_v33 = vld [vmem:[%s4833_s6 + $0x250] sm:$0xff]   ;;  %v3789_v2 = vld [vmem:[%s4833_s6 + $0x300] sm:$0xff]  }
 0x2c1   :  { %v1232_v52 = vpop.f32.mrb[39].mxu1  ;;  %v3588_v9 = vpop.f32.mrb[27].mxu0  ;;  %v3763_v40 = vld [vmem:[%s4833_s6 + $0x2c0] sm:$0xff]  }
 0x2c2   :  { %v1500_v45 = vpack.c.bf16 %v1484_v31, %v1484_v31  ;;  %3433 = vmatpush3.bf16.msra.mxu1 %v3736_v30  ;;  %3451 = vmatpush3.bf16.msra.mxu0 %v3737_v32  ;;  %v1499_v30 = vpack.c.bf16 %v4459_v46, %v4459_v46  ;;  %v3758_v32 = vld [vmem:[%s4833_s6 + $0x1f8] sm:$0xff]   ;;  %v3761_v31 = vld [vmem:[%s4833_s6 + $0x208] sm:$0xff]  }
 0x2c3   :  { %3434 = vmatprep.subr.bf16.mxu1 %v3738_v35  ;;  %3452 = vmatprep.subr.bf16.mxu0 %v3739_v36  ;;  %v818_v35 = vmax.f32 %v795_v60, 0.0  ;;  %v3760_v36 = vld [vmem:[%s4833_s6 + $0x1b8] sm:$0xff]  }
 0x2c4   :  { %2647 = vmatprep.mubr.bf16.mxu1 %v1500_v45  ;;  %v3765_v45 = vld [vmem:[%s4833_s6 + $0x280] sm:$0xff]   ;;  %v3798_v60 = vld [vmem:[%s4833_s6 + $0x358] sm:$0xff]  }
 0x2c6   :  { %3435 = vmatpush3.bf16.msra.mxu1 %v3740_v47  ;;  %3453 = vmatpush3.bf16.msra.mxu0 %v3741_v20  ;;  %v1268_v3 = vpop.f32.mrb[40].mxu1  ;;  %v3766_v20 = vld [vmem:[%s4833_s6 + $0x258] sm:$0xff]  }
 0x2c7   :  { %v4490_v57 = vmul.f32 %v1268_v3, %v809_v49  ;;  %v1270_v62 = vpop.f32.mrb[41].mxu1  ;;  %3436 = vmatprep.subr.bf16.mxu1 %v3742_v26  ;;  %3454 = vmatprep.subr.bf16.mxu0 %v3743_v27  ;;  %v3767_v26 = vld [vmem:[%s4833_s6 + $0x2c8] sm:$0xff]   ;;  %v3768_v49 = vld [vmem:[%s4833_s6 + $0x218] sm:$0xff]   ;;  %v3771_v3 = vld [vmem:[%s4833_s6 + $0x2d0] sm:$0xff]  }
 0x2c8   :  { %v1486_v17 = vmul.f32 %v1270_v62, %v810_v0  ;;  %v1272_v4 = vpop.f32.mrb[42].mxu1  ;;  %v3769_v0 = vld [vmem:[%s4833_s6 + $0x288] sm:$0xff]   ;;  %v3775_v62 = vld [vmem:[%s4833_s6 + $0x2d8] sm:$0xff]  }
 0x2c9   :  { %v1273_v7 = vpop.f32.mrb[43].mxu1  ;;  %v1501_v47 = vpack.c.bf16 %v4490_v57, %v4490_v57  ;;  %v3774_v57 = vld [vmem:[%s4833_s6 + $0x268] sm:$0xff]   ;;  %v3779_v4 = vld [vmem:[%s4833_s6 + $0x2e0] sm:$0xff]  }
 0x2ca   :  { %v1502_v8 = vpack.c.bf16 %v1486_v17, %v1486_v17  ;;  %3437 = vmatpush3.bf16.msra.mxu1 %v3744_v54  ;;  %3455 = vmatpush3.bf16.msra.mxu0 %v3745_v55  ;;  %v3772_v54 = vld [vmem:[%s4833_s6 + $0x220] sm:$0xff]   ;;  %v3773_v55 = vld [vmem:[%s4833_s6 + $0x290] sm:$0xff]  }
 0x2cb   :  { %3438 = vmatprep.subr.bf16.mxu1 %v3746_v50  ;;  %3456 = vmatprep.subr.bf16.mxu0 %v3747_v56  ;;  %v3776_v50 = vld [vmem:[%s4833_s6 + $0x228] sm:$0xff]   ;;  %v3777_v56 = vld [vmem:[%s4833_s6 + $0x298] sm:$0xff]   ;;  %v3778_v17 = vld [vmem:[%s4833_s6 + $0x270] sm:$0xff]  }
 0x2cc   :  { %2687 = vmatprep.mubr.bf16.mxu0 %v1502_v8  ;;  %v3780_v7 = vld [vmem:[%s4833_s6 + $0x230] sm:$0xff]   ;;  %v3782_v8 = vld [vmem:[%s4833_s6 + $0x278] sm:$0xff]  }
 0x2ce   :  { %3439 = vmatpush3.bf16.msra.mxu1 %v3748_v10  ;;  %3457 = vmatpush3.bf16.msra.mxu0 %v3749_v11  ;;  %v1350_v19 = vpop.f32.mrb[44].mxu1  ;;  %v3783_v10 = vld [vmem:[%s4833_s6 + $0x2e8] sm:$0xff]   ;;  %v3784_v11 = vld [vmem:[%s4833_s6 + $0x238] sm:$0xff]  }
 0x2cf   :  { %v4520_v5 = vmul.f32 %v1350_v19, %v813_v13  ;;  %v1352_v1 = vpop.f32.mrb[45].mxu1  ;;  %3440 = vmatprep.subr.bf16.mxu1 %v3750_v12  ;;  %3458 = vmatprep.subr.bf16.mxu0 %v3751_v38  ;;  %v3785_v12 = vld [vmem:[%s4833_s6 + $0x2a8] sm:$0xff]   ;;  %v3786_v38 = vld [vmem:[%s4833_s6 + $0x2f0] sm:$0xff]   ;;  %v3787_v13 = vld [vmem:[%s4833_s6 + $0x340] sm:$0xff]   ;;  %v1503_v19 = vpack.c.bf16 %v4407_v61, %v4407_v61 }
 0x2d0   :  { %v1490_v37 = vmul.f32 %v1352_v1, %v814_v16  ;;  %v1354_v24 = vpop.f32.mrb[46].mxu1  ;;  %v3788_v16 = vld [vmem:[%s4833_s6 + $0x2b0] sm:$0xff]   ;;  %v1508_v1 = vpack.c.bf16 %v4431_v22, %v4431_v22  ;;  %v3792_v61 = vld [vmem:[%s4833_s6 + $0x2b8] sm:$0xff]   ;;  %v3795_v22 = vld [vmem:[%s4833_s6 + $0x3c0] sm:$0xff]  }
 0x2d1   :  { %v1355_v25 = vpop.f32.mrb[47].mxu1  ;;  %v3797_v24 = vld [vmem:[%s4833_s6 + $0x380] sm:$0xff]  }
 0x2d2   :  { %3441 = vmatpush3.bf16.msra.mxu1 %v3752_v21  ;;  %3459 = vmatpush3.bf16.msra.mxu0 %v3753_v23  ;;  %v1506_v27 = vpack.c.bf16 %v1490_v37, %v1490_v37  ;;  %v3790_v21 = vld [vmem:[%s4833_s6 + $0x2f8] sm:$0xff]   ;;  %v3791_v23 = vld [vmem:[%s4833_s6 + $0x348] sm:$0xff]   ;;  %v3796_v37 = vld [vmem:[%s4833_s6 + $0x310] sm:$0xff]   ;;  %v1505_v25 = vpack.c.bf16 %v4520_v5, %v4520_v5 }
 0x2d3   :  { %3460 = vmatprep.subr.bf16.mxu0 %v3754_v18  ;;  %3470 = vmatprep.subr.bf16.mxu1 %v3755_v48  ;;  %v3793_v18 = vld [vmem:[%s4833_s6 + $0x308] sm:$0xff]   ;;  %v3794_v48 = vld [vmem:[%s4833_s6 + $0x350] sm:$0xff]   ;;  %v3800_v5 = vld [vmem:[%s4833_s6 + $0x318] sm:$0xff]  }
 0x2d5   :  { %2648 = vmatmul.mubr.bf16.vlgmr.msra.gmra.mrb[56].mxu1 %v1499_v30  ;;  %v3801_v30 = vld [vmem:[%s4833_s6 + $0x388] sm:$0xff]  }
 0x2d6   :  { %3461 = vmatpush3.bf16.msra.mxu0 %v3756_v28  ;;  %3471 = vmatpush3.bf16.msra.mxu1 %v3757_v15  ;;  %v1432_v46 = vpop.f32.mrb[48].mxu1  ;;  %v3799_v28 = vld [vmem:[%s4833_s6 + $0x3c8] sm:$0xff]  }
 0x2d7   :  { %2727 = vmatprep.mubr.bf16.mxu1 %v1504_v6  ;;  %v4552_v39 = vmul.f32 %v1432_v46, %v817_v14  ;;  %v1434_v42 = vpop.f32.mrb[49].mxu1  ;;  %3462 = vmatprep.subr.bf16.mxu0 %v3758_v32  ;;  %v3802_v32 = vld [vmem:[%s4833_s6 + $0x360] sm:$0xff]   ;;  %v3805_v6 = vld [vmem:[%s4833_s6 + $0x390] sm:$0xff]   ;;  %v3807_v46 = vld [vmem:[%s4833_s6 + $0x3d8] sm:$0xff]  }
 0x2d8   :  { %v4560_v41 = vmul.f32 %v1434_v42, %v818_v35  ;;  %v1436_v52 = vpop.f32.mrb[50].mxu1  ;;  %3472 = vmatprep.subr.bf16.mxu1 %v3759_v43  ;;  %v3803_v43 = vld [vmem:[%s4833_s6 + $0x3d0] sm:$0xff]   ;;  %v3804_v14 = vld [vmem:[%s4833_s6 + $0x320] sm:$0xff]   ;;  %v3806_v35 = vld [vmem:[%s4833_s6 + $0x368] sm:$0xff]  }
 0x2d9   :  { %v1437_v9 = vpop.f32.mrb[51].mxu1  ;;  %v3810_v42 = vld [vmem:[%s4833_s6 + $0x370] sm:$0xff]   ;;  %v3814_v52 = vld [vmem:[%s4833_s6 + $0x378] sm:$0xff]  }
 0x2da   :  { %3463 = vmatpush3.bf16.msra.mxu0 %v3760_v36  ;;  %3473 = vmatpush3.bf16.msra.mxu1 %v3761_v31  ;;  %v1510_v15 = vpack.c.bf16 %v4560_v41, %v4560_v41  ;;  %v3808_v36 = vld [vmem:[%s4833_s6 + $0x328] sm:$0xff]   ;;  %v3809_v31 = vld [vmem:[%s4833_s6 + $0x398] sm:$0xff]   ;;  %v3813_v41 = vld [vmem:[%s4833_s6 + $0x3a0] sm:$0xff]  }
 0x2db   :  { %3474 = vmatprep.subr.bf16.mxu1 %v3762_v33  ;;  %3492 = vmatprep.subr.bf16.mxu0 %v3763_v40  ;;  %v3811_v33 = vld [vmem:[%s4833_s6 + $0x3e0] sm:$0xff]   ;;  %v3812_v40 = vld [vmem:[%s4833_s6 + $0x330] sm:$0xff]   ;;  %v3815_v9 = vld [vmem:[%s4833_s6 + $0x3e8] sm:$0xff]  }
 0x2dd   :  { %2688 = vmatmul.mubr.bf16.vlgmr.msra.gmra.mrb[32].mxu0 %v1501_v47  ;;  %v3818_v47 = vld [vmem:[%s4833_s6 + $0x3f0] sm:$0xff]  }
 0x2de   :  { %3475 = vmatpush3.bf16.msra.mxu1 %v3764_v44  ;;  %3493 = vmatpush3.bf16.msra.mxu0 %v3765_v45  ;;  %v3816_v44 = vld [vmem:[%s4833_s6 + $0x338] sm:$0xff]   ;;  %v3817_v45 = vld [vmem:[%s4833_s6 + $0x3a8] sm:$0xff]  }
 0x2df   :  { %2767 = vmatprep.mubr.bf16.mxu0 %v1506_v27  ;;  %3476 = vmatprep.subr.bf16.mxu1 %v3766_v20  ;;  %v3819_v20 = vld [vmem:[%s4833_s6 + $0x3b0] sm:$0xff]   ;;  %v3820_v27 = vld [vmem:[%s4833_s6 + $0x3f8] sm:$0xff]  }
 0x2e0   :  { %3494 = vmatprep.subr.bf16.mxu0 %v3767_v26  ;;  %v1507_v26 = vpack.c.bf16 %v4426_v63, %v4426_v63  ;;  %v3822_v63 = vld [vmem:[%s4834_s7 + $0x40] sm:$0xff]  }
 0x2e2   :  { %3477 = vmatpush3.bf16.msra.mxu1 %v3768_v49  ;;  %3495 = vmatpush3.bf16.msra.mxu0 %v3769_v0  ;;  %v3821_v49 = vld [vmem:[%s4833_s6 + $0x3b8] sm:$0xff]   ;;  %v802_v0 = vmax.f32 %v4204_v59, 0.0  ;;  %v3825_v59 = vld [vmem:[%s4834_s7 + $0x8] sm:$0xff]  }
 0x2e3   :  { %3478 = vmatprep.subr.bf16.mxu1 %v3770_v53  ;;  %3496 = vmatprep.subr.bf16.mxu0 %v3771_v3  ;;  %v3823_v53 = vld [vmem:[%s4834_s7] sm:$0xff]   ;;  %v1509_v3 = vpack.c.bf16 %v4552_v39, %v4552_v39  ;;  %v3827_v39 = vld [vmem:[%s4834_s7 + $0x10] sm:$0xff]  }
 0x2e6   :  { %3479 = vmatpush3.bf16.msra.mxu1 %v3772_v54  ;;  %3497 = vmatpush3.bf16.msra.mxu0 %v3773_v55  ;;  %v3824_v54 = vld [vmem:[%s4834_s7 + $0x48] sm:$0xff]   ;;  %v2856_v55 = vpack.c.bf16 %v802_v0, %v802_v0 }
 0x2e7   :  { %3480 = vmatprep.subr.bf16.mxu1 %v3774_v57  ;;  %3498 = vmatprep.subr.bf16.mxu0 %v3775_v62  ;;  %v3826_v57 = vld [vmem:[%s4834_s7 + $0x50] sm:$0xff]   ;;  %v3828_v62 = vld [vmem:[%s4834_s7 + $0x58] sm:$0xff]  }
 0x2ea   :  { %3481 = vmatpush3.bf16.msra.mxu1 %v3776_v50  ;;  %3499 = vmatpush3.bf16.msra.mxu0 %v3777_v56  ;;  %v3829_v50 = vld [vmem:[%s4834_s7 + $0x18] sm:$0xff]   ;;  %v3830_v56 = vld [vmem:[%s4834_s7 + $0x60] sm:$0xff]  }
 0x2eb   :  { %3482 = vmatprep.subr.bf16.mxu1 %v3778_v17  ;;  %3500 = vmatprep.subr.bf16.mxu0 %v3779_v4  ;;  %v3831_v17 = vld [vmem:[%s4834_s7 + $0x20] sm:$0xff]   ;;  %v3832_v4 = vld [vmem:[%s4834_s7 + $0x68] sm:$0xff]  }
 0x2ee   :  { %3483 = vmatpush3.bf16.msra.mxu1 %v3780_v7  ;;  %3501 = vmatpush3.bf16.msra.mxu0 %v3781_v51  ;;  %v3833_v7 = vld [vmem:[%s4834_s7 + $0x28] sm:$0xff]   ;;  %v3834_v51 = vld [vmem:[%s4834_s7 + $0x70] sm:$0xff]  }
 0x2ef   :  { %3484 = vmatprep.subr.bf16.mxu1 %v3782_v8  ;;  %3502 = vmatprep.subr.bf16.mxu0 %v3783_v10  ;;  %v3835_v8 = vld [vmem:[%s4834_s7 + $0x30] sm:$0xff]   ;;  %v3836_v10 = vld [vmem:[%s4834_s7 + $0x78] sm:$0xff]  }
 0x2f2   :  { %3485 = vmatpush3.bf16.msra.mxu1 %v3784_v11  ;;  %3503 = vmatpush3.bf16.msra.mxu0 %v3785_v12  ;;  %v3837_v11 = vld [vmem:[%s4834_s7 + $0x38] sm:$0xff]   ;;  %v801_v12 = vmax.f32 %v4202_v58, 0.0 }
 0x2f3   :  { %3504 = vmatprep.subr.bf16.mxu0 %v3786_v38  ;;  %3514 = vmatprep.subr.bf16.mxu1 %v3787_v13  ;;  %v3838_v13 = vld [vmem:[%s4835_s8] sm:$0xff]  }
 0x2f4   :  { %v2855_v38 = vpack.c.bf16 %v801_v12, %v801_v12 }
 0x2f5   :  { %2728 = vmatmul.mubr.bf16.vlgmr.msra.gmra.mrb[60].mxu1 %v1503_v19 }
 0x2f6   :  { %3505 = vmatpush3.bf16.msra.mxu0 %v3788_v16  ;;  %3515 = vmatpush3.bf16.msra.mxu1 %v3789_v2  ;;  %v3839_v16 = vld [vmem:[%s4835_s8 + $0x8] sm:$0xff]  }
 0x2f7   :  { %2807 = vmatprep.mubr.bf16.mxu1 %v1508_v1  ;;  %3506 = vmatprep.subr.bf16.mxu0 %v3790_v21 }
 0x2f8   :  { %3516 = vmatprep.subr.bf16.mxu1 %v3791_v23 }
 0x2fa   :  { %3507 = vmatpush3.bf16.msra.mxu0 %v3792_v61  ;;  %3517 = vmatpush3.bf16.msra.mxu1 %v3793_v18 }
 0x2fb   :  { %3518 = vmatprep.subr.bf16.mxu1 %v3794_v48  ;;  %3536 = vmatprep.subr.bf16.mxu0 %v3795_v22 }
 0x2fd   :  { %2768 = vmatmul.mubr.bf16.vlgmr.msra.gmra.mrb[36].mxu0 %v1505_v25 }
 0x2fe   :  { %3519 = vmatpush3.bf16.msra.mxu1 %v3796_v37  ;;  %3537 = vmatpush3.bf16.msra.mxu0 %v3797_v24 }
 0x2ff   :  { %2847 = vmatprep.mubr.bf16.mxu0 %v1510_v15  ;;  %3520 = vmatprep.subr.bf16.mxu1 %v3798_v60 }
 0x300   :  { %3538 = vmatprep.subr.bf16.mxu0 %v3799_v28 }
 0x302   :  { %3521 = vmatpush3.bf16.msra.mxu1 %v3800_v5  ;;  %3539 = vmatpush3.bf16.msra.mxu0 %v3801_v30 }
 0x303   :  { %3522 = vmatprep.subr.bf16.mxu1 %v3802_v32  ;;  %3540 = vmatprep.subr.bf16.mxu0 %v3803_v43 }
 0x306   :  { %3523 = vmatpush3.bf16.msra.mxu1 %v3804_v14  ;;  %3541 = vmatpush3.bf16.msra.mxu0 %v3805_v6 }
 0x307   :  { %3524 = vmatprep.subr.bf16.mxu1 %v3806_v35  ;;  %3542 = vmatprep.subr.bf16.mxu0 %v3807_v46 }
 0x30a   :  { %3525 = vmatpush3.bf16.msra.mxu1 %v3808_v36  ;;  %3543 = vmatpush3.bf16.msra.mxu0 %v3809_v31 }
 0x30b   :  { %3526 = vmatprep.subr.bf16.mxu1 %v3810_v42  ;;  %3544 = vmatprep.subr.bf16.mxu0 %v3811_v33 }
 0x30e   :  { %3527 = vmatpush3.bf16.msra.mxu1 %v3812_v40  ;;  %3545 = vmatpush3.bf16.msra.mxu0 %v3813_v41 }
 0x30f   :  { %3528 = vmatprep.subr.bf16.mxu1 %v3814_v52  ;;  %3546 = vmatprep.subr.bf16.mxu0 %v3815_v9 }
 0x312   :  { %3529 = vmatpush3.bf16.msra.mxu1 %v3816_v44  ;;  %3547 = vmatpush3.bf16.msra.mxu0 %v3817_v45 }
 0x313   :  { %3548 = vmatprep.subr.bf16.mxu0 %v3818_v47  ;;  %3589 = vmatprep.subr.bf16.mxu1 %v3869_v34 }
 0x315   :  { %2808 = vmatmul.mubr.bf16.vlgmr.msra.gmra.mrb[64].mxu1 %v1507_v26 }
 0x316   :  { %3549 = vmatpush3.bf16.msra.mxu0 %v3819_v20  ;;  %3593 = vmatprep.mubr.msk.bf16.mxu1 %vm3870_vm3, %v3869_v34 }
 0x317   :  { %3550 = vmatprep.subr.bf16.mxu0 %v3820_v27  ;;  %3590 = vmatpush3.bf16.msra.mxu1 %v3838_v13 }
 0x318   :  { %3591 = vmatprep.subr.bf16.mxu1 %v3869_v34 }
 0x31a   :  { %3551 = vmatpush3.bf16.msra.mxu0 %v3821_v49 }
 0x31b   :  { %3561 = vmatprep.subr.bf16.mxu0 %v3822_v63  ;;  %3592 = vmatpush3.bf16.msra.mxu1 %v3839_v16 }
 0x31d   :  { %2848 = vmatmul.mubr.bf16.vlgmr.msra.gmra.mrb[40].mxu0 %v1509_v3 }
 0x31e   :  { %3562 = vmatpush3.bf16.msra.mxu0 %v3823_v53  ;;  %3077 = vmatprep.mubr.bf16.mxu0 %v2856_v55 }
 0x31f   :  { %3563 = vmatprep.subr.bf16.mxu0 %v3824_v54 }
 0x322   :  { %3564 = vmatpush3.bf16.msra.mxu0 %v3825_v59 }
 0x323   :  { %3565 = vmatprep.subr.bf16.mxu0 %v3826_v57 }
 0x326   :  { %3566 = vmatpush3.bf16.msra.mxu0 %v3827_v39 }
 0x327   :  { %3567 = vmatprep.subr.bf16.mxu0 %v3828_v62 }
 0x32a   :  { %3568 = vmatpush3.bf16.msra.mxu0 %v3829_v50 }
 0x32b   :  { %3569 = vmatprep.subr.bf16.mxu0 %v3830_v56 }
 0x32e   :  { %3570 = vmatpush3.bf16.msra.mxu0 %v3831_v17 }
 0x32f   :  { %3571 = vmatprep.subr.bf16.mxu0 %v3832_v4 }
 0x332   :  { %3572 = vmatpush3.bf16.msra.mxu0 %v3833_v7  ;;  %v3357_v7 = vld [vmem:[%s4836_s9] ss:$0 sm:$0xff] }
 0x333   :  { %3573 = vmatprep.subr.bf16.mxu0 %v3834_v51 }
 0x336   :  { %3574 = vmatpush3.bf16.msra.mxu0 %v3835_v8 }
 0x337   :  { %3575 = vmatprep.subr.bf16.mxu0 %v3836_v10 }
 0x33a   :  { %3576 = vmatpush3.bf16.msra.mxu0 %v3837_v11 }
 0x33d   :  { %3078 = vmatmul.mubr.bf16.vlgmr.msra.gmra.mrb[44].mxu0 %v2855_v38 }
 0x388   :  { %v3398_v2 = vpop.f32.mrb[52].mxu1 }
 0x389   :  { %v3399_v19 = vpop.f32.mrb[53].mxu1 }
 0x38a   :  { %v3400_v21 = vadd.f32 %v3399_v19, %v3398_v2  ;;  %v3401_v58 = vpop.f32.mrb[54].mxu1 }
 0x38b   :  { %v3402_v23 = vpop.f32.mrb[55].mxu1 }
 0x38c   :  { %v2570_v1 = vadd.f32 %v3400_v21, %v4451_v29 }
 0x390   :  { %v3420_v61 = vpop.f32.mrb[28].mxu0 }
 0x391   :  { %v3421_v18 = vpop.f32.mrb[29].mxu0 }
 0x392   :  { %v3422_v48 = vadd.f32 %v3421_v18, %v3420_v61  ;;  %v3423_v22 = vpop.f32.mrb[30].mxu0 }
 0x393   :  { %v3424_v37 = vpop.f32.mrb[31].mxu0 }
 0x394   :  { %v2610_v24 = vadd.f32 %v3422_v48, %v2570_v1 }
 0x3a8   :  { %v3442_v25 = vpop.f32.mrb[56].mxu1 }
 0x3a9   :  { %v3443_v34 = vpop.f32.mrb[57].mxu1 }
 0x3aa   :  { %v3444_v60 = vadd.f32 %v3443_v34, %v3442_v25  ;;  %v3445_v28 = vpop.f32.mrb[58].mxu1 }
 0x3ab   :  { %v3446_v15 = vpop.f32.mrb[59].mxu1 }
 0x3ac   :  { %v2650_v5 = vadd.f32 %v3444_v60, %v2610_v24 }
 0x3b0   :  { %v3464_v30 = vpop.f32.mrb[32].mxu0 }
 0x3b1   :  { %v3465_v32 = vpop.f32.mrb[33].mxu0 }
 0x3b2   :  { %v3466_v43 = vadd.f32 %v3465_v32, %v3464_v30  ;;  %v3467_v14 = vpop.f32.mrb[34].mxu0 }
 0x3b3   :  { %v3468_v6 = vpop.f32.mrb[35].mxu0 }
 0x3b4   :  { %v2690_v35 = vadd.f32 %v3466_v43, %v2650_v5 }
 0x3c8   :  { %v3486_v46 = vpop.f32.mrb[60].mxu1 }
 0x3c9   :  { %v3487_v29 = vpop.f32.mrb[61].mxu1 }
 0x3ca   :  { %v3488_v36 = vadd.f32 %v3487_v29, %v3486_v46  ;;  %v3489_v31 = vpop.f32.mrb[62].mxu1 }
 0x3cb   :  { %v3490_v42 = vpop.f32.mrb[63].mxu1 }
 0x3cc   :  { %v2730_v33 = vadd.f32 %v3488_v36, %v2690_v35 }
 0x3d0   :  { %v3508_v40 = vpop.f32.mrb[36].mxu0 }
 0x3d1   :  { %v3509_v41 = vpop.f32.mrb[37].mxu0 }
 0x3d2   :  { %v3510_v52 = vadd.f32 %v3509_v41, %v3508_v40  ;;  %v3511_v9 = vpop.f32.mrb[38].mxu0 }
 0x3d3   :  { %v3512_v44 = vpop.f32.mrb[39].mxu0 }
 0x3d4   :  { %v2770_v45 = vadd.f32 %v3510_v52, %v2730_v33 }
 0x3e8   :  { %v3530_v47 = vpop.f32.mrb[64].mxu1 }
 0x3e9   :  { %v3531_v20 = vpop.f32.mrb[65].mxu1 }
 0x3ea   :  { %v3532_v26 = vadd.f32 %v3531_v20, %v3530_v47  ;;  %v3533_v27 = vpop.f32.mrb[66].mxu1 }
 0x3eb   :  { %v3534_v49 = vpop.f32.mrb[67].mxu1 }
 0x3ec   :  { %v2810_v63 = vadd.f32 %v3532_v26, %v2770_v45 }
 0x3f0   :  { %v3552_v0 = vpop.f32.mrb[40].mxu0 }
 0x3f1   :  { %v3553_v53 = vpop.f32.mrb[41].mxu0 }
 0x3f2   :  { %v3554_v3 = vadd.f32 %v3553_v53, %v3552_v0  ;;  %v3555_v54 = vpop.f32.mrb[42].mxu0 }
 0x3f3   :  { %v3556_v55 = vpop.f32.mrb[43].mxu0 }
 0x3f4   :  { %v2850_v59 = vadd.f32 %v3554_v3, %v2810_v63 }
 0x3f6   :  { %v2889_v57 = vpack.c.bf16 %v2850_v59, %v2850_v59 }
 0x3f8   :  { %3594 = vmatmul.mubr.msk.bf16.vlgmr.msra.gmra.mrb[68].mxu1 %vm385_vm0, %v2889_v57 }
 0x410   :  { %v3577_v39 = vpop.f32.mrb[44].mxu0 }
 0x411   :  { %v3578_v62 = vpop.f32.mrb[45].mxu0 }
 0x412   :  { %v3579_v50 = vadd.f32 %v3578_v62, %v3577_v39  ;;  %v3580_v56 = vpop.f32.mrb[46].mxu0 }
 0x413   :  { %v3581_v17 = vpop.f32.mrb[47].mxu0 }
 0x4cb   :  { %v2943_v4 = vpop.f32.mrb[68].mxu1 }
 0x4cc   :  { %v3080_v51 = vadd.f32 %v3579_v50, %v2943_v4  ;;  %v3595_v8 = vpop.f32.mrb[69].mxu1 }
 0x4cd   :  { %v2946_v10 = vpop.f32.mrb[70].mxu1 }
 0x4ce   :  { %v3596_v11 = vpop.f32.mrb[71].mxu1  ;;  %v3092_v12 = vadd.f32 %v3357_v7, %v3080_v51 }
 0x4d0   :  { %3093 = vst [vmem:[#allocation2] sm:$0xff] %v3092_v12 }
 0x4d1   :  { %3855 = shalt.err (!%p3852_p4)
}
 0x4d2   :  { %s3856_s9 = scalar_lea.hbm %s4837_s10, 128 }
 0x4d3   :  { %p3857_p5 = scmp.ne.s32.totalorder %s4837_s10, %s3856_s9  ;;  %p3860_p6 = scmp.lt.u32.totalorder %s3856_s9, %s4837_s10 }
 0x4d5   :  { %p3862_p7 = pnand %p3860_p6, %p3857_p5 }
 0x4d7   :  { %3865 = shalt.err (!%p3862_p7)
}
 0x4d8   :  { %3103 = dma.vmem_to_hbm [thread:$0]  %s3101_s24, 128, %s4837_s10, [#allocation3]  }
 0x4d9   :  { %3866 = dma.done.wait [#allocation3], 128  }
 0x4da   :  { %3867 = vsyncadd [#allocation3], 4294967168 }
 0x4db   :  { %3107 = vsyncpa [#allocation3], 1 }

</bundles_post_ra>
